<compile_context>
chip_gen: v5e
topology: v5e:2x2
jax: 0.10.0
libtpu: 0.0.40
codegen_flags: <defaults>
</compile_context>

<pallas_src>
import functools

import jax
import jax.numpy as jnp
from jax import lax
from jax.experimental import pallas as pl
from jax.experimental.pallas import tpu as pltpu

EMBEDDING_DIM = 100
HIDDEN_DIM = 100
VOCAB_SIZE = 12     # len(word_to_ix) — synthetic
TAGSET_SIZE = 6     # len(tag_to_ix)  — synthetic
SEQ_LEN = 8

_LANE = 128
_SUBLANE = 8


def _round_up(x, m):
    return (x + m - 1) // m * m


def _pad2(x, shape):
    return jnp.pad(x, [(0, s - d) for s, d in zip(shape, x.shape)])


def lstm_tagger_kernel(emb_ref, wih_ref, whh_ref, b_ref, wout_ref, bout_ref,
                       out_ref, xp_ref, hs_ref, *, num_tags):
    """emb_ref:[Tp,Ep]  wih_ref:[Ep,4Hp]  whh_ref:[Hp,4Hp]  b_ref:[1,4Hp]
       wout_ref:[Hp,Kp] bout_ref:[1,Kp]   out_ref:[Tp,Kp]
       xp_ref:[Tp,4Hp]  hs_ref:[Tp,Hp]    (VMEM scratch)"""
    Tp = emb_ref.shape[0]
    Hp = whh_ref.shape[0]

    # (1) Hoisted input projection: one batched [Tp,Ep]@[Ep,4Hp] MXU pass,
    #     off the serial critical path.
    xp_ref[...] = (
        jnp.dot(emb_ref[...], wih_ref[...], preferred_element_type=jnp.float32)
        + b_ref[...])

    # (2) Serial recurrence: one fused (1,Hp)@(Hp,4Hp) matmul + VPU/EUP gate
    #     math per step.  Unrolled so the scheduler can overlap steps.
    def step(t, carry):
        h, c = carry
        gates = xp_ref[pl.ds(t, 1), :] + jnp.dot(
            h, whh_ref[...], preferred_element_type=jnp.float32)      # (1, 4Hp)
        i_g = jax.nn.sigmoid(gates[:, 0 * Hp:1 * Hp])
        f_g = jax.nn.sigmoid(gates[:, 1 * Hp:2 * Hp])
        g_g = jnp.tanh(gates[:, 2 * Hp:3 * Hp])
        o_g = jax.nn.sigmoid(gates[:, 3 * Hp:4 * Hp])
        c_new = f_g * c + i_g * g_g
        h_new = o_g * jnp.tanh(c_new)
        hs_ref[pl.ds(t, 1), :] = h_new
        return (h_new, c_new)

    h0 = jnp.zeros((1, Hp), jnp.float32)
    c0 = jnp.zeros((1, Hp), jnp.float32)
    lax.fori_loop(0, Tp, step, (h0, c0), unroll=True)

    # (3) Batched output projection + softmax over the real tag columns only.
    logits = (jnp.dot(hs_ref[...], wout_ref[...],
                      preferred_element_type=jnp.float32) + bout_ref[...])
    col = lax.broadcasted_iota(jnp.int32, logits.shape, 1)
    logits = jnp.where(col < num_tags, logits, -jnp.inf)
    m = jnp.max(logits, axis=1, keepdims=True)
    e = jnp.exp(logits - m)
    out_ref[...] = e / jnp.sum(e, axis=1, keepdims=True)


def lstm_tagger_forward(token_ids, params):
    emb_table, w_ih, w_hh, b, w_out, b_out = params
    T = token_ids.shape[0]
    E = emb_table.shape[1]
    H = w_hh.shape[1]
    K = w_out.shape[1]

    Tp = _round_up(T, _SUBLANE)
    Ep = _round_up(E, _LANE)
    Hp = _round_up(H, _LANE)
    Kp = _round_up(K, _LANE)

    # Embedding lookup (glue, not the hot path).
    # TODO(synk): could fold the gather into the kernel via scalar-prefetched
    # token_ids (PrefetchScalarGridSpec); low priority per review.
    embeds = jnp.take(emb_table, token_ids, axis=0)                  # (T, E)
    emb_p = _pad2(embeds, (Tp, Ep))

    # Fuse + pad gate weights: [4, R, H] -> [Rp, 4*Hp]  (gate order i, f, g, o).
    wih_f = jnp.concatenate([_pad2(w_ih[k], (Ep, Hp)) for k in range(4)], axis=1)
    whh_f = jnp.concatenate([_pad2(w_hh[k], (Hp, Hp)) for k in range(4)], axis=1)
    b_f = jnp.concatenate([_pad2(b[k], (1, Hp)) for k in range(4)], axis=1)

    wout_p = _pad2(w_out, (Hp, Kp))
    bout_p = _pad2(b_out, (1, Kp))

    vspec = pl.BlockSpec(memory_space=pltpu.MemorySpace.VMEM)  # whole arrays resident, grid=()
    out_p = pl.pallas_call(
        functools.partial(lstm_tagger_kernel, num_tags=K),
        out_shape=jax.ShapeDtypeStruct((Tp, Kp), jnp.float32),
        in_specs=[vspec] * 6,
        out_specs=vspec,
        scratch_shapes=[pltpu.VMEM((Tp, 4 * Hp), jnp.float32),
                        pltpu.VMEM((Tp, Hp), jnp.float32)],
    )(emb_p, wih_f, whh_f, b_f, wout_p, bout_p)
    return out_p[:T, :K]


def init_params(key):
    """Deterministic synthetic params, shapes matching torch.nn.{Embedding,LSTM,Linear}."""
    k = 1.0 / jnp.sqrt(jnp.float32(HIDDEN_DIM))
    keys = jax.random.split(key, 6)
    emb = jax.random.normal(keys[0], (VOCAB_SIZE, EMBEDDING_DIM), jnp.float32)
    w_ih = jax.random.uniform(keys[1], (4, EMBEDDING_DIM, HIDDEN_DIM), jnp.float32, -k, k)
    w_hh = jax.random.uniform(keys[2], (4, HIDDEN_DIM, HIDDEN_DIM), jnp.float32, -k, k)
    # combined bias (b_ih + b_hh)
    b = jax.random.uniform(keys[3], (4, 1, HIDDEN_DIM), jnp.float32, -2 * k, 2 * k)
    w_out = jax.random.uniform(keys[4], (HIDDEN_DIM, TAGSET_SIZE), jnp.float32, -k, k)
    b_out = jax.random.uniform(keys[5], (1, TAGSET_SIZE), jnp.float32, -k, k)
    return emb, w_ih, w_hh, b, w_out, b_out


def reference_forward(token_ids, params):
    """Pure-JAX reference of the same math for a correctness check."""
    emb_table, w_ih, w_hh, b, w_out, b_out = params
    embeds = jnp.take(emb_table, token_ids, axis=0)

    def step(carry, x):
        h, c = carry
        x = x[None, :]
        g = [x @ w_ih[k] + h @ w_hh[k] + b[k] for k in range(4)]
        i_g = jax.nn.sigmoid(g[0])
        f_g = jax.nn.sigmoid(g[1])
        g_g = jnp.tanh(g[2])
        o_g = jax.nn.sigmoid(g[3])
        c = f_g * c + i_g * g_g
        h = o_g * jnp.tanh(c)
        return (h, c), h[0]

    init = (jnp.zeros((1, HIDDEN_DIM), jnp.float32), jnp.zeros((1, HIDDEN_DIM), jnp.float32))
    _, hs = lax.scan(step, init, embeds)
    logits = hs @ w_out + b_out[0]
    return jax.nn.softmax(logits, axis=1)


if __name__ == "__main__":
    key = jax.random.PRNGKey(0)
    pkey, tkey = jax.random.split(key)
    params = init_params(pkey)
    token_ids = jax.random.randint(tkey, (SEQ_LEN,), 0, VOCAB_SIZE)

    proba = jax.jit(lstm_tagger_forward)(token_ids, params)
    jax.block_until_ready(proba)

    ref = reference_forward(token_ids, params)
    assert proba.shape == (SEQ_LEN, TAGSET_SIZE)
    assert bool(jnp.allclose(jnp.sum(proba, axis=1), 1.0, atol=1e-5))
    assert bool(jnp.allclose(proba, ref, atol=1e-5, rtol=1e-5))
    print("KERNEL_OK")
</pallas_src>

<mosaic_0001>
module attributes {stable_mosaic.version = 11 : i64} {
  func.func @lstm_tagger_kernel(%arg0: memref<8x128xf32, #tpu.memory_space<vmem>>, %arg1: memref<128x512xf32, #tpu.memory_space<vmem>>, %arg2: memref<128x512xf32, #tpu.memory_space<vmem>>, %arg3: memref<1x512xf32, #tpu.memory_space<vmem>>, %arg4: memref<128x128xf32, #tpu.memory_space<vmem>>, %arg5: memref<1x128xf32, #tpu.memory_space<vmem>>, %arg6: memref<8x128xf32, #tpu.memory_space<vmem>>, %arg7: memref<8x512xf32, #tpu.memory_space<vmem>>, %arg8: memref<8x128xf32, #tpu.memory_space<vmem>>) attributes {dimension_semantics = [], scalar_prefetch = 0 : i64, scratch_operands = 2 : i64, tpu.core_type = #tpu.core_type<tc>} {
    %c0 = arith.constant 0 : index
    %c0_0 = arith.constant 0 : index
    %0 = vector.load %arg0[%c0, %c0_0] : memref<8x128xf32, #tpu.memory_space<vmem>>, vector<8x128xf32>
    %c0_1 = arith.constant 0 : index
    %c0_2 = arith.constant 0 : index
    %1 = vector.load %arg1[%c0_1, %c0_2] : memref<128x512xf32, #tpu.memory_space<vmem>>, vector<128x512xf32>
    %cst = arith.constant dense<0.000000e+00> : vector<8x512xf32>
    %2 = tpu.matmul %0, %1, %cst {dimension_numbers = #tpu.dot_dimension_numbers<[1], [0], [0], [1], [0, 0, 1, 1], [], []>} : vector<8x128xf32>, vector<128x512xf32>, vector<8x512xf32> -> vector<8x512xf32>
    %c0_3 = arith.constant 0 : index
    %c0_4 = arith.constant 0 : index
    %3 = vector.load %arg3[%c0_3, %c0_4] : memref<1x512xf32, #tpu.memory_space<vmem>>, vector<1x512xf32>
    %4 = vector.broadcast %3 : vector<1x512xf32> to vector<8x512xf32>
    %5 = arith.addf %2, %4 : vector<8x512xf32>
    %c0_5 = arith.constant 0 : index
    %c0_6 = arith.constant 0 : index
    %6 = vector.load %arg7[%c0_5, %c0_6] : memref<8x512xf32, #tpu.memory_space<vmem>>, vector<8x512xf32>
    tpu.vector_store %arg7[%c0_5, %c0_6], %5 {strides = array<i32>} : memref<8x512xf32, #tpu.memory_space<vmem>>, vector<8x512xf32>,
    %cst_7 = arith.constant 0.000000e+00 : f32
    %7 = vector.broadcast %cst_7 : f32 to vector<1x128xf32>
    %cst_8 = arith.constant 0.000000e+00 : f32
    %8 = vector.broadcast %cst_8 : f32 to vector<1x128xf32>
    %c0_i32 = arith.constant 0 : i32
    %9 = arith.index_cast %c0_i32 : i32 to index
    %c0_9 = arith.constant 0 : index
    %10 = vector.load %arg7[%9, %c0_9] : memref<8x512xf32, #tpu.memory_space<vmem>>, vector<1x512xf32>
    %c0_10 = arith.constant 0 : index
    %c0_11 = arith.constant 0 : index
    %11 = vector.load %arg2[%c0_10, %c0_11] : memref<128x512xf32, #tpu.memory_space<vmem>>, vector<128x512xf32>
    %cst_12 = arith.constant dense<0.000000e+00> : vector<1x512xf32>
    %12 = tpu.matmul %7, %11, %cst_12 {dimension_numbers = #tpu.dot_dimension_numbers<[1], [0], [0], [1], [0, 0, 1, 1], [], []>} : vector<1x128xf32>, vector<128x512xf32>, vector<1x512xf32> -> vector<1x512xf32>
    %13 = arith.addf %10, %12 : vector<1x512xf32>
    %14 = vector.extract_strided_slice %13 {offsets = [0, 0], sizes = [1, 128], strides = [1, 1]} : vector<1x512xf32> to vector<1x128xf32>
    %15 = arith.negf %14 : vector<1x128xf32>
    %16 = math.exp %15 : vector<1x128xf32>
    %cst_13 = arith.constant 1.000000e+00 : f32
    %17 = vector.broadcast %cst_13 : f32 to vector<1x128xf32>
    %18 = arith.addf %17, %16 : vector<1x128xf32>
    %19 = arith.divf %17, %18 : vector<1x128xf32>
    %20 = vector.extract_strided_slice %13 {offsets = [0, 128], sizes = [1, 128], strides = [1, 1]} : vector<1x512xf32> to vector<1x128xf32>
    %21 = arith.negf %20 : vector<1x128xf32>
    %22 = math.exp %21 : vector<1x128xf32>
    %cst_14 = arith.constant 1.000000e+00 : f32
    %23 = vector.broadcast %cst_14 : f32 to vector<1x128xf32>
    %24 = arith.addf %23, %22 : vector<1x128xf32>
    %25 = arith.divf %23, %24 : vector<1x128xf32>
    %26 = vector.extract_strided_slice %13 {offsets = [0, 256], sizes = [1, 128], strides = [1, 1]} : vector<1x512xf32> to vector<1x128xf32>
    %27 = math.tanh %26 : vector<1x128xf32>
    %28 = vector.extract_strided_slice %13 {offsets = [0, 384], sizes = [1, 128], strides = [1, 1]} : vector<1x512xf32> to vector<1x128xf32>
    %29 = arith.negf %28 : vector<1x128xf32>
    %30 = math.exp %29 : vector<1x128xf32>
    %cst_15 = arith.constant 1.000000e+00 : f32
    %31 = vector.broadcast %cst_15 : f32 to vector<1x128xf32>
    %32 = arith.addf %31, %30 : vector<1x128xf32>
    %33 = arith.divf %31, %32 : vector<1x128xf32>
    %34 = arith.mulf %25, %8 : vector<1x128xf32>
    %35 = arith.mulf %19, %27 : vector<1x128xf32>
    %36 = arith.addf %34, %35 : vector<1x128xf32>
    %37 = math.tanh %36 : vector<1x128xf32>
    %38 = arith.mulf %33, %37 : vector<1x128xf32>
    %39 = arith.index_cast %c0_i32 : i32 to index
    %c0_16 = arith.constant 0 : index
    %40 = vector.load %arg8[%39, %c0_16] : memref<8x128xf32, #tpu.memory_space<vmem>>, vector<1x128xf32>
    tpu.vector_store %arg8[%39, %c0_16], %38 {strides = array<i32>} : memref<8x128xf32, #tpu.memory_space<vmem>>, vector<1x128xf32>,
    %c1_i32 = arith.constant 1 : i32
    %41 = arith.index_cast %c1_i32 : i32 to index
    %c0_17 = arith.constant 0 : index
    %42 = vector.load %arg7[%41, %c0_17] : memref<8x512xf32, #tpu.memory_space<vmem>>, vector<1x512xf32>
    %c0_18 = arith.constant 0 : index
    %c0_19 = arith.constant 0 : index
    %43 = vector.load %arg2[%c0_18, %c0_19] : memref<128x512xf32, #tpu.memory_space<vmem>>, vector<128x512xf32>
    %cst_20 = arith.constant dense<0.000000e+00> : vector<1x512xf32>
    %44 = tpu.matmul %38, %43, %cst_20 {dimension_numbers = #tpu.dot_dimension_numbers<[1], [0], [0], [1], [0, 0, 1, 1], [], []>} : vector<1x128xf32>, vector<128x512xf32>, vector<1x512xf32> -> vector<1x512xf32>
    %45 = arith.addf %42, %44 : vector<1x512xf32>
    %46 = vector.extract_strided_slice %45 {offsets = [0, 0], sizes = [1, 128], strides = [1, 1]} : vector<1x512xf32> to vector<1x128xf32>
    %47 = arith.negf %46 : vector<1x128xf32>
    %48 = math.exp %47 : vector<1x128xf32>
    %cst_21 = arith.constant 1.000000e+00 : f32
    %49 = vector.broadcast %cst_21 : f32 to vector<1x128xf32>
    %50 = arith.addf %49, %48 : vector<1x128xf32>
    %51 = arith.divf %49, %50 : vector<1x128xf32>
    %52 = vector.extract_strided_slice %45 {offsets = [0, 128], sizes = [1, 128], strides = [1, 1]} : vector<1x512xf32> to vector<1x128xf32>
    %53 = arith.negf %52 : vector<1x128xf32>
    %54 = math.exp %53 : vector<1x128xf32>
    %cst_22 = arith.constant 1.000000e+00 : f32
    %55 = vector.broadcast %cst_22 : f32 to vector<1x128xf32>
    %56 = arith.addf %55, %54 : vector<1x128xf32>
    %57 = arith.divf %55, %56 : vector<1x128xf32>
    %58 = vector.extract_strided_slice %45 {offsets = [0, 256], sizes = [1, 128], strides = [1, 1]} : vector<1x512xf32> to vector<1x128xf32>
    %59 = math.tanh %58 : vector<1x128xf32>
    %60 = vector.extract_strided_slice %45 {offsets = [0, 384], sizes = [1, 128], strides = [1, 1]} : vector<1x512xf32> to vector<1x128xf32>
    %61 = arith.negf %60 : vector<1x128xf32>
    %62 = math.exp %61 : vector<1x128xf32>
    %cst_23 = arith.constant 1.000000e+00 : f32
    %63 = vector.broadcast %cst_23 : f32 to vector<1x128xf32>
    %64 = arith.addf %63, %62 : vector<1x128xf32>
    %65 = arith.divf %63, %64 : vector<1x128xf32>
    %66 = arith.mulf %57, %36 : vector<1x128xf32>
    %67 = arith.mulf %51, %59 : vector<1x128xf32>
    %68 = arith.addf %66, %67 : vector<1x128xf32>
    %69 = math.tanh %68 : vector<1x128xf32>
    %70 = arith.mulf %65, %69 : vector<1x128xf32>
    %71 = arith.index_cast %c1_i32 : i32 to index
    %c0_24 = arith.constant 0 : index
    %72 = vector.load %arg8[%71, %c0_24] : memref<8x128xf32, #tpu.memory_space<vmem>>, vector<1x128xf32>
    tpu.vector_store %arg8[%71, %c0_24], %70 {strides = array<i32>} : memref<8x128xf32, #tpu.memory_space<vmem>>, vector<1x128xf32>,
    %c2_i32 = arith.constant 2 : i32
    %73 = arith.index_cast %c2_i32 : i32 to index
    %c0_25 = arith.constant 0 : index
    %74 = vector.load %arg7[%73, %c0_25] : memref<8x512xf32, #tpu.memory_space<vmem>>, vector<1x512xf32>
    %c0_26 = arith.constant 0 : index
    %c0_27 = arith.constant 0 : index
    %75 = vector.load %arg2[%c0_26, %c0_27] : memref<128x512xf32, #tpu.memory_space<vmem>>, vector<128x512xf32>
    %cst_28 = arith.constant dense<0.000000e+00> : vector<1x512xf32>
    %76 = tpu.matmul %70, %75, %cst_28 {dimension_numbers = #tpu.dot_dimension_numbers<[1], [0], [0], [1], [0, 0, 1, 1], [], []>} : vector<1x128xf32>, vector<128x512xf32>, vector<1x512xf32> -> vector<1x512xf32>
    %77 = arith.addf %74, %76 : vector<1x512xf32>
    %78 = vector.extract_strided_slice %77 {offsets = [0, 0], sizes = [1, 128], strides = [1, 1]} : vector<1x512xf32> to vector<1x128xf32>
    %79 = arith.negf %78 : vector<1x128xf32>
    %80 = math.exp %79 : vector<1x128xf32>
    %cst_29 = arith.constant 1.000000e+00 : f32
    %81 = vector.broadcast %cst_29 : f32 to vector<1x128xf32>
    %82 = arith.addf %81, %80 : vector<1x128xf32>
    %83 = arith.divf %81, %82 : vector<1x128xf32>
    %84 = vector.extract_strided_slice %77 {offsets = [0, 128], sizes = [1, 128], strides = [1, 1]} : vector<1x512xf32> to vector<1x128xf32>
    %85 = arith.negf %84 : vector<1x128xf32>
    %86 = math.exp %85 : vector<1x128xf32>
    %cst_30 = arith.constant 1.000000e+00 : f32
    %87 = vector.broadcast %cst_30 : f32 to vector<1x128xf32>
    %88 = arith.addf %87, %86 : vector<1x128xf32>
    %89 = arith.divf %87, %88 : vector<1x128xf32>
    %90 = vector.extract_strided_slice %77 {offsets = [0, 256], sizes = [1, 128], strides = [1, 1]} : vector<1x512xf32> to vector<1x128xf32>
    %91 = math.tanh %90 : vector<1x128xf32>
    %92 = vector.extract_strided_slice %77 {offsets = [0, 384], sizes = [1, 128], strides = [1, 1]} : vector<1x512xf32> to vector<1x128xf32>
    %93 = arith.negf %92 : vector<1x128xf32>
    %94 = math.exp %93 : vector<1x128xf32>
    %cst_31 = arith.constant 1.000000e+00 : f32
    %95 = vector.broadcast %cst_31 : f32 to vector<1x128xf32>
    %96 = arith.addf %95, %94 : vector<1x128xf32>
    %97 = arith.divf %95, %96 : vector<1x128xf32>
    %98 = arith.mulf %89, %68 : vector<1x128xf32>
    %99 = arith.mulf %83, %91 : vector<1x128xf32>
    %100 = arith.addf %98, %99 : vector<1x128xf32>
    %101 = math.tanh %100 : vector<1x128xf32>
    %102 = arith.mulf %97, %101 : vector<1x128xf32>
    %103 = arith.index_cast %c2_i32 : i32 to index
    %c0_32 = arith.constant 0 : index
    %104 = vector.load %arg8[%103, %c0_32] : memref<8x128xf32, #tpu.memory_space<vmem>>, vector<1x128xf32>
    tpu.vector_store %arg8[%103, %c0_32], %102 {strides = array<i32>} : memref<8x128xf32, #tpu.memory_space<vmem>>, vector<1x128xf32>,
    %c3_i32 = arith.constant 3 : i32
    %105 = arith.index_cast %c3_i32 : i32 to index
    %c0_33 = arith.constant 0 : index
    %106 = vector.load %arg7[%105, %c0_33] : memref<8x512xf32, #tpu.memory_space<vmem>>, vector<1x512xf32>
    %c0_34 = arith.constant 0 : index
    %c0_35 = arith.constant 0 : index
    %107 = vector.load %arg2[%c0_34, %c0_35] : memref<128x512xf32, #tpu.memory_space<vmem>>, vector<128x512xf32>
    %cst_36 = arith.constant dense<0.000000e+00> : vector<1x512xf32>
    %108 = tpu.matmul %102, %107, %cst_36 {dimension_numbers = #tpu.dot_dimension_numbers<[1], [0], [0], [1], [0, 0, 1, 1], [], []>} : vector<1x128xf32>, vector<128x512xf32>, vector<1x512xf32> -> vector<1x512xf32>
    %109 = arith.addf %106, %108 : vector<1x512xf32>
    %110 = vector.extract_strided_slice %109 {offsets = [0, 0], sizes = [1, 128], strides = [1, 1]} : vector<1x512xf32> to vector<1x128xf32>
    %111 = arith.negf %110 : vector<1x128xf32>
    %112 = math.exp %111 : vector<1x128xf32>
    %cst_37 = arith.constant 1.000000e+00 : f32
    %113 = vector.broadcast %cst_37 : f32 to vector<1x128xf32>
    %114 = arith.addf %113, %112 : vector<1x128xf32>
    %115 = arith.divf %113, %114 : vector<1x128xf32>
    %116 = vector.extract_strided_slice %109 {offsets = [0, 128], sizes = [1, 128], strides = [1, 1]} : vector<1x512xf32> to vector<1x128xf32>
    %117 = arith.negf %116 : vector<1x128xf32>
    %118 = math.exp %117 : vector<1x128xf32>
    %cst_38 = arith.constant 1.000000e+00 : f32
    %119 = vector.broadcast %cst_38 : f32 to vector<1x128xf32>
    %120 = arith.addf %119, %118 : vector<1x128xf32>
    %121 = arith.divf %119, %120 : vector<1x128xf32>
    %122 = vector.extract_strided_slice %109 {offsets = [0, 256], sizes = [1, 128], strides = [1, 1]} : vector<1x512xf32> to vector<1x128xf32>
    %123 = math.tanh %122 : vector<1x128xf32>
    %124 = vector.extract_strided_slice %109 {offsets = [0, 384], sizes = [1, 128], strides = [1, 1]} : vector<1x512xf32> to vector<1x128xf32>
    %125 = arith.negf %124 : vector<1x128xf32>
    %126 = math.exp %125 : vector<1x128xf32>
    %cst_39 = arith.constant 1.000000e+00 : f32
    %127 = vector.broadcast %cst_39 : f32 to vector<1x128xf32>
    %128 = arith.addf %127, %126 : vector<1x128xf32>
    %129 = arith.divf %127, %128 : vector<1x128xf32>
    %130 = arith.mulf %121, %100 : vector<1x128xf32>
    %131 = arith.mulf %115, %123 : vector<1x128xf32>
    %132 = arith.addf %130, %131 : vector<1x128xf32>
    %133 = math.tanh %132 : vector<1x128xf32>
    %134 = arith.mulf %129, %133 : vector<1x128xf32>
    %135 = arith.index_cast %c3_i32 : i32 to index
    %c0_40 = arith.constant 0 : index
    %136 = vector.load %arg8[%135, %c0_40] : memref<8x128xf32, #tpu.memory_space<vmem>>, vector<1x128xf32>
    tpu.vector_store %arg8[%135, %c0_40], %134 {strides = array<i32>} : memref<8x128xf32, #tpu.memory_space<vmem>>, vector<1x128xf32>,
    %c4_i32 = arith.constant 4 : i32
    %137 = arith.index_cast %c4_i32 : i32 to index
    %c0_41 = arith.constant 0 : index
    %138 = vector.load %arg7[%137, %c0_41] : memref<8x512xf32, #tpu.memory_space<vmem>>, vector<1x512xf32>
    %c0_42 = arith.constant 0 : index
    %c0_43 = arith.constant 0 : index
    %139 = vector.load %arg2[%c0_42, %c0_43] : memref<128x512xf32, #tpu.memory_space<vmem>>, vector<128x512xf32>
    %cst_44 = arith.constant dense<0.000000e+00> : vector<1x512xf32>
    %140 = tpu.matmul %134, %139, %cst_44 {dimension_numbers = #tpu.dot_dimension_numbers<[1], [0], [0], [1], [0, 0, 1, 1], [], []>} : vector<1x128xf32>, vector<128x512xf32>, vector<1x512xf32> -> vector<1x512xf32>
    %141 = arith.addf %138, %140 : vector<1x512xf32>
    %142 = vector.extract_strided_slice %141 {offsets = [0, 0], sizes = [1, 128], strides = [1, 1]} : vector<1x512xf32> to vector<1x128xf32>
    %143 = arith.negf %142 : vector<1x128xf32>
    %144 = math.exp %143 : vector<1x128xf32>
    %cst_45 = arith.constant 1.000000e+00 : f32
    %145 = vector.broadcast %cst_45 : f32 to vector<1x128xf32>
    %146 = arith.addf %145, %144 : vector<1x128xf32>
    %147 = arith.divf %145, %146 : vector<1x128xf32>
    %148 = vector.extract_strided_slice %141 {offsets = [0, 128], sizes = [1, 128], strides = [1, 1]} : vector<1x512xf32> to vector<1x128xf32>
    %149 = arith.negf %148 : vector<1x128xf32>
    %150 = math.exp %149 : vector<1x128xf32>
    %cst_46 = arith.constant 1.000000e+00 : f32
    %151 = vector.broadcast %cst_46 : f32 to vector<1x128xf32>
    %152 = arith.addf %151, %150 : vector<1x128xf32>
    %153 = arith.divf %151, %152 : vector<1x128xf32>
    %154 = vector.extract_strided_slice %141 {offsets = [0, 256], sizes = [1, 128], strides = [1, 1]} : vector<1x512xf32> to vector<1x128xf32>
    %155 = math.tanh %154 : vector<1x128xf32>
    %156 = vector.extract_strided_slice %141 {offsets = [0, 384], sizes = [1, 128], strides = [1, 1]} : vector<1x512xf32> to vector<1x128xf32>
    %157 = arith.negf %156 : vector<1x128xf32>
    %158 = math.exp %157 : vector<1x128xf32>
    %cst_47 = arith.constant 1.000000e+00 : f32
    %159 = vector.broadcast %cst_47 : f32 to vector<1x128xf32>
    %160 = arith.addf %159, %158 : vector<1x128xf32>
    %161 = arith.divf %159, %160 : vector<1x128xf32>
    %162 = arith.mulf %153, %132 : vector<1x128xf32>
    %163 = arith.mulf %147, %155 : vector<1x128xf32>
    %164 = arith.addf %162, %163 : vector<1x128xf32>
    %165 = math.tanh %164 : vector<1x128xf32>
    %166 = arith.mulf %161, %165 : vector<1x128xf32>
    %167 = arith.index_cast %c4_i32 : i32 to index
    %c0_48 = arith.constant 0 : index
    %168 = vector.load %arg8[%167, %c0_48] : memref<8x128xf32, #tpu.memory_space<vmem>>, vector<1x128xf32>
    tpu.vector_store %arg8[%167, %c0_48], %166 {strides = array<i32>} : memref<8x128xf32, #tpu.memory_space<vmem>>, vector<1x128xf32>,
    %c5_i32 = arith.constant 5 : i32
    %169 = arith.index_cast %c5_i32 : i32 to index
    %c0_49 = arith.constant 0 : index
    %170 = vector.load %arg7[%169, %c0_49] : memref<8x512xf32, #tpu.memory_space<vmem>>, vector<1x512xf32>
    %c0_50 = arith.constant 0 : index
    %c0_51 = arith.constant 0 : index
    %171 = vector.load %arg2[%c0_50, %c0_51] : memref<128x512xf32, #tpu.memory_space<vmem>>, vector<128x512xf32>
    %cst_52 = arith.constant dense<0.000000e+00> : vector<1x512xf32>
    %172 = tpu.matmul %166, %171, %cst_52 {dimension_numbers = #tpu.dot_dimension_numbers<[1], [0], [0], [1], [0, 0, 1, 1], [], []>} : vector<1x128xf32>, vector<128x512xf32>, vector<1x512xf32> -> vector<1x512xf32>
    %173 = arith.addf %170, %172 : vector<1x512xf32>
    %174 = vector.extract_strided_slice %173 {offsets = [0, 0], sizes = [1, 128], strides = [1, 1]} : vector<1x512xf32> to vector<1x128xf32>
    %175 = arith.negf %174 : vector<1x128xf32>
    %176 = math.exp %175 : vector<1x128xf32>
    %cst_53 = arith.constant 1.000000e+00 : f32
    %177 = vector.broadcast %cst_53 : f32 to vector<1x128xf32>
    %178 = arith.addf %177, %176 : vector<1x128xf32>
    %179 = arith.divf %177, %178 : vector<1x128xf32>
    %180 = vector.extract_strided_slice %173 {offsets = [0, 128], sizes = [1, 128], strides = [1, 1]} : vector<1x512xf32> to vector<1x128xf32>
    %181 = arith.negf %180 : vector<1x128xf32>
    %182 = math.exp %181 : vector<1x128xf32>
    %cst_54 = arith.constant 1.000000e+00 : f32
    %183 = vector.broadcast %cst_54 : f32 to vector<1x128xf32>
    %184 = arith.addf %183, %182 : vector<1x128xf32>
    %185 = arith.divf %183, %184 : vector<1x128xf32>
    %186 = vector.extract_strided_slice %173 {offsets = [0, 256], sizes = [1, 128], strides = [1, 1]} : vector<1x512xf32> to vector<1x128xf32>
    %187 = math.tanh %186 : vector<1x128xf32>
    %188 = vector.extract_strided_slice %173 {offsets = [0, 384], sizes = [1, 128], strides = [1, 1]} : vector<1x512xf32> to vector<1x128xf32>
    %189 = arith.negf %188 : vector<1x128xf32>
    %190 = math.exp %189 : vector<1x128xf32>
    %cst_55 = arith.constant 1.000000e+00 : f32
    %191 = vector.broadcast %cst_55 : f32 to vector<1x128xf32>
    %192 = arith.addf %191, %190 : vector<1x128xf32>
    %193 = arith.divf %191, %192 : vector<1x128xf32>
    %194 = arith.mulf %185, %164 : vector<1x128xf32>
    %195 = arith.mulf %179, %187 : vector<1x128xf32>
    %196 = arith.addf %194, %195 : vector<1x128xf32>
    %197 = math.tanh %196 : vector<1x128xf32>
    %198 = arith.mulf %193, %197 : vector<1x128xf32>
    %199 = arith.index_cast %c5_i32 : i32 to index
    %c0_56 = arith.constant 0 : index
    %200 = vector.load %arg8[%199, %c0_56] : memref<8x128xf32, #tpu.memory_space<vmem>>, vector<1x128xf32>
    tpu.vector_store %arg8[%199, %c0_56], %198 {strides = array<i32>} : memref<8x128xf32, #tpu.memory_space<vmem>>, vector<1x128xf32>,
    %c6_i32 = arith.constant 6 : i32
    %201 = arith.index_cast %c6_i32 : i32 to index
    %c0_57 = arith.constant 0 : index
    %202 = vector.load %arg7[%201, %c0_57] : memref<8x512xf32, #tpu.memory_space<vmem>>, vector<1x512xf32>
    %c0_58 = arith.constant 0 : index
    %c0_59 = arith.constant 0 : index
    %203 = vector.load %arg2[%c0_58, %c0_59] : memref<128x512xf32, #tpu.memory_space<vmem>>, vector<128x512xf32>
    %cst_60 = arith.constant dense<0.000000e+00> : vector<1x512xf32>
    %204 = tpu.matmul %198, %203, %cst_60 {dimension_numbers = #tpu.dot_dimension_numbers<[1], [0], [0], [1], [0, 0, 1, 1], [], []>} : vector<1x128xf32>, vector<128x512xf32>, vector<1x512xf32> -> vector<1x512xf32>
    %205 = arith.addf %202, %204 : vector<1x512xf32>
    %206 = vector.extract_strided_slice %205 {offsets = [0, 0], sizes = [1, 128], strides = [1, 1]} : vector<1x512xf32> to vector<1x128xf32>
    %207 = arith.negf %206 : vector<1x128xf32>
    %208 = math.exp %207 : vector<1x128xf32>
    %cst_61 = arith.constant 1.000000e+00 : f32
    %209 = vector.broadcast %cst_61 : f32 to vector<1x128xf32>
    %210 = arith.addf %209, %208 : vector<1x128xf32>
    %211 = arith.divf %209, %210 : vector<1x128xf32>
    %212 = vector.extract_strided_slice %205 {offsets = [0, 128], sizes = [1, 128], strides = [1, 1]} : vector<1x512xf32> to vector<1x128xf32>
    %213 = arith.negf %212 : vector<1x128xf32>
    %214 = math.exp %213 : vector<1x128xf32>
    %cst_62 = arith.constant 1.000000e+00 : f32
    %215 = vector.broadcast %cst_62 : f32 to vector<1x128xf32>
    %216 = arith.addf %215, %214 : vector<1x128xf32>
    %217 = arith.divf %215, %216 : vector<1x128xf32>
    %218 = vector.extract_strided_slice %205 {offsets = [0, 256], sizes = [1, 128], strides = [1, 1]} : vector<1x512xf32> to vector<1x128xf32>
    %219 = math.tanh %218 : vector<1x128xf32>
    %220 = vector.extract_strided_slice %205 {offsets = [0, 384], sizes = [1, 128], strides = [1, 1]} : vector<1x512xf32> to vector<1x128xf32>
    %221 = arith.negf %220 : vector<1x128xf32>
    %222 = math.exp %221 : vector<1x128xf32>
    %cst_63 = arith.constant 1.000000e+00 : f32
    %223 = vector.broadcast %cst_63 : f32 to vector<1x128xf32>
    %224 = arith.addf %223, %222 : vector<1x128xf32>
    %225 = arith.divf %223, %224 : vector<1x128xf32>
    %226 = arith.mulf %217, %196 : vector<1x128xf32>
    %227 = arith.mulf %211, %219 : vector<1x128xf32>
    %228 = arith.addf %226, %227 : vector<1x128xf32>
    %229 = math.tanh %228 : vector<1x128xf32>
    %230 = arith.mulf %225, %229 : vector<1x128xf32>
    %231 = arith.index_cast %c6_i32 : i32 to index
    %c0_64 = arith.constant 0 : index
    %232 = vector.load %arg8[%231, %c0_64] : memref<8x128xf32, #tpu.memory_space<vmem>>, vector<1x128xf32>
    tpu.vector_store %arg8[%231, %c0_64], %230 {strides = array<i32>} : memref<8x128xf32, #tpu.memory_space<vmem>>, vector<1x128xf32>,
    %c7_i32 = arith.constant 7 : i32
    %233 = arith.index_cast %c7_i32 : i32 to index
    %c0_65 = arith.constant 0 : index
    %234 = vector.load %arg7[%233, %c0_65] : memref<8x512xf32, #tpu.memory_space<vmem>>, vector<1x512xf32>
    %c0_66 = arith.constant 0 : index
    %c0_67 = arith.constant 0 : index
    %235 = vector.load %arg2[%c0_66, %c0_67] : memref<128x512xf32, #tpu.memory_space<vmem>>, vector<128x512xf32>
    %cst_68 = arith.constant dense<0.000000e+00> : vector<1x512xf32>
    %236 = tpu.matmul %230, %235, %cst_68 {dimension_numbers = #tpu.dot_dimension_numbers<[1], [0], [0], [1], [0, 0, 1, 1], [], []>} : vector<1x128xf32>, vector<128x512xf32>, vector<1x512xf32> -> vector<1x512xf32>
    %237 = arith.addf %234, %236 : vector<1x512xf32>
    %238 = vector.extract_strided_slice %237 {offsets = [0, 0], sizes = [1, 128], strides = [1, 1]} : vector<1x512xf32> to vector<1x128xf32>
    %239 = arith.negf %238 : vector<1x128xf32>
    %240 = math.exp %239 : vector<1x128xf32>
    %cst_69 = arith.constant 1.000000e+00 : f32
    %241 = vector.broadcast %cst_69 : f32 to vector<1x128xf32>
    %242 = arith.addf %241, %240 : vector<1x128xf32>
    %243 = arith.divf %241, %242 : vector<1x128xf32>
    %244 = vector.extract_strided_slice %237 {offsets = [0, 128], sizes = [1, 128], strides = [1, 1]} : vector<1x512xf32> to vector<1x128xf32>
    %245 = arith.negf %244 : vector<1x128xf32>
    %246 = math.exp %245 : vector<1x128xf32>
    %cst_70 = arith.constant 1.000000e+00 : f32
    %247 = vector.broadcast %cst_70 : f32 to vector<1x128xf32>
    %248 = arith.addf %247, %246 : vector<1x128xf32>
    %249 = arith.divf %247, %248 : vector<1x128xf32>
    %250 = vector.extract_strided_slice %237 {offsets = [0, 256], sizes = [1, 128], strides = [1, 1]} : vector<1x512xf32> to vector<1x128xf32>
    %251 = math.tanh %250 : vector<1x128xf32>
    %252 = vector.extract_strided_slice %237 {offsets = [0, 384], sizes = [1, 128], strides = [1, 1]} : vector<1x512xf32> to vector<1x128xf32>
    %253 = arith.negf %252 : vector<1x128xf32>
    %254 = math.exp %253 : vector<1x128xf32>
    %cst_71 = arith.constant 1.000000e+00 : f32
    %255 = vector.broadcast %cst_71 : f32 to vector<1x128xf32>
    %256 = arith.addf %255, %254 : vector<1x128xf32>
    %257 = arith.divf %255, %256 : vector<1x128xf32>
    %258 = arith.mulf %249, %228 : vector<1x128xf32>
    %259 = arith.mulf %243, %251 : vector<1x128xf32>
    %260 = arith.addf %258, %259 : vector<1x128xf32>
    %261 = math.tanh %260 : vector<1x128xf32>
    %262 = arith.mulf %257, %261 : vector<1x128xf32>
    %263 = arith.index_cast %c7_i32 : i32 to index
    %c0_72 = arith.constant 0 : index
    %264 = vector.load %arg8[%263, %c0_72] : memref<8x128xf32, #tpu.memory_space<vmem>>, vector<1x128xf32>
    tpu.vector_store %arg8[%263, %c0_72], %262 {strides = array<i32>} : memref<8x128xf32, #tpu.memory_space<vmem>>, vector<1x128xf32>,
    %c8_i32 = arith.constant 8 : i32
    %c0_73 = arith.constant 0 : index
    %c0_74 = arith.constant 0 : index
    %265 = vector.load %arg8[%c0_73, %c0_74] : memref<8x128xf32, #tpu.memory_space<vmem>>, vector<8x128xf32>
    %c0_75 = arith.constant 0 : index
    %c0_76 = arith.constant 0 : index
    %266 = vector.load %arg4[%c0_75, %c0_76] : memref<128x128xf32, #tpu.memory_space<vmem>>, vector<128x128xf32>
    %cst_77 = arith.constant dense<0.000000e+00> : vector<8x128xf32>
    %267 = tpu.matmul %265, %266, %cst_77 {dimension_numbers = #tpu.dot_dimension_numbers<[1], [0], [0], [1], [0, 0, 1, 1], [], []>} : vector<8x128xf32>, vector<128x128xf32>, vector<8x128xf32> -> vector<8x128xf32>
    %c0_78 = arith.constant 0 : index
    %c0_79 = arith.constant 0 : index
    %268 = vector.load %arg5[%c0_78, %c0_79] : memref<1x128xf32, #tpu.memory_space<vmem>>, vector<1x128xf32>
    %269 = vector.broadcast %268 : vector<1x128xf32> to vector<8x128xf32>
    %270 = arith.addf %267, %269 : vector<8x128xf32>
    %271 = tpu.iota {dimensions = array<i32: 1>} : vector<8x128xi32>
    %c6_i32_80 = arith.constant 6 : i32
    %272 = vector.broadcast %c6_i32_80 : i32 to vector<8x128xi32>
    %273 = arith.cmpi slt, %271, %272 : vector<8x128xi32>
    %cst_81 = arith.constant 0xFF800000 : f32
    %274 = vector.broadcast %cst_81 : f32 to vector<8x128xf32>
    %275 = arith.select %273, %270, %274 : vector<8x128xi1>, vector<8x128xf32>
    %cst_82 = arith.constant dense<0xFF800000> : vector<8xf32>
    %276 = vector.multi_reduction <maximumf>, %275, %cst_82 [1] : vector<8x128xf32> to vector<8xf32>
    %277 = vector.shape_cast %276 : vector<8xf32> to vector<8x1xf32>
    %278 = vector.broadcast %277 : vector<8x1xf32> to vector<8x128xf32>
    %279 = arith.subf %275, %278 : vector<8x128xf32>
    %280 = math.exp %279 : vector<8x128xf32>
    %cst_83 = arith.constant dense<0.000000e+00> : vector<8xf32>
    %281 = vector.multi_reduction <add>, %280, %cst_83 [1] : vector<8x128xf32> to vector<8xf32>
    %282 = vector.shape_cast %281 : vector<8xf32> to vector<8x1xf32>
    %283 = vector.broadcast %282 : vector<8x1xf32> to vector<8x128xf32>
    %284 = arith.divf %280, %283 : vector<8x128xf32>
    %c0_84 = arith.constant 0 : index
    %c0_85 = arith.constant 0 : index
    %285 = vector.load %arg6[%c0_84, %c0_85] : memref<8x128xf32, #tpu.memory_space<vmem>>, vector<8x128xf32>
    tpu.vector_store %arg6[%c0_84, %c0_85], %284 {strides = array<i32>} : memref<8x128xf32, #tpu.memory_space<vmem>>, vector<8x128xf32>,
    return
  }
}

</mosaic_0001>

<bundles_post_ra>
// kernel: lstm_tagger_forward.1
= control target key start
LH: loop header
LB: loop body
LE: loop exit
PB: predicated region body
PF: predicated region fallthrough
CT: control target
= control target key end

     0   :  { %s4171_s0 = inlined_call_operand.vmem [shape: f32[8,128], index: 0, kind: input, shape index: {}]   ;;  %s4172_s1 = inlined_call_operand.vmem [shape: f32[128,512], index: 1, kind: input, shape index: {}]   ;;  %s4173_s2 = inlined_call_operand.vmem [shape: f32[128,512], index: 2, kind: input, shape index: {}]   ;;  %s4174_s3 = inlined_call_operand.vmem [shape: f32[1,512], index: 3, kind: input, shape index: {}]   ;;  %s4175_s4 = inlined_call_operand.vmem [shape: f32[128,128], index: 4, kind: input, shape index: {}]   ;;  %s4176_s5 = inlined_call_operand.vmem [shape: f32[1,128], index: 5, kind: input, shape index: {}]   ;;  %s4177_s6 = inlined_call_operand.hbm [shape: f32[8,128], index: 6, kind: output, shape index: {}]  }
   0x1   :  { %v87_v0 = vld [vmem:[%s4172_s1 + $0x1f0] sm:$0xff]  ;;  %v88_v1 = vld [vmem:[%s4172_s1 + $0x1f8] sm:$0xff]  ;;  %v86_v6 = vld [vmem:[%s4172_s1 + $0x1e8] sm:$0xff] }
   0x2   :  { %v83_v2 = vld [vmem:[%s4172_s1 + $0x1d0] sm:$0xff]  ;;  %139 = vmatpush.msra.mxu2 %v87_v0  ;;  %159 = vmatpush.msra.mxu3 %v88_v1  ;;  %v84_v3 = vld [vmem:[%s4172_s1 + $0x1d8] sm:$0xff]  ;;  %v85_v7 = vld [vmem:[%s4172_s1 + $0x1e0] sm:$0xff] }
   0x3   :  { %v79_v4 = vld [vmem:[%s4172_s1 + $0x1b0] sm:$0xff]  ;;  %v80_v5 = vld [vmem:[%s4172_s1 + $0x1b8] sm:$0xff]  ;;  %v82_v8 = vld [vmem:[%s4172_s1 + $0x1c8] sm:$0xff]  ;;  %119 = vmatpush.msra.mxu1 %v86_v6  ;;  %99 = vmatpush.msra.mxu0 %v85_v7 }
   0x4   :  { %140 = vmatpush.msra.mxu2 %v83_v2  ;;  %160 = vmatpush.msra.mxu3 %v84_v3  ;;  %v75_v9 = vld [vmem:[%s4172_s1 + $0x190] sm:$0xff]  ;;  %v76_v10 = vld [vmem:[%s4172_s1 + $0x198] sm:$0xff]  ;;  %v81_v11 = vld [vmem:[%s4172_s1 + $0x1c0] sm:$0xff] }
   0x5   :  { %v78_v12 = vld [vmem:[%s4172_s1 + $0x1a8] sm:$0xff]  ;;  %v77_v13 = vld [vmem:[%s4172_s1 + $0x1a0] sm:$0xff]  ;;  %120 = vmatpush.msra.mxu1 %v82_v8  ;;  %v71_v14 = vld [vmem:[%s4172_s1 + $0x170] sm:$0xff]  ;;  %100 = vmatpush.msra.mxu0 %v81_v11 }
   0x6   :  { %141 = vmatpush.msra.mxu2 %v79_v4  ;;  %161 = vmatpush.msra.mxu3 %v80_v5  ;;  %v72_v15 = vld [vmem:[%s4172_s1 + $0x178] sm:$0xff]  ;;  %v74_v16 = vld [vmem:[%s4172_s1 + $0x188] sm:$0xff]  ;;  %v73_v17 = vld [vmem:[%s4172_s1 + $0x180] sm:$0xff] }
   0x7   :  { %121 = vmatpush.msra.mxu1 %v78_v12  ;;  %v67_v18 = vld [vmem:[%s4172_s1 + $0x150] sm:$0xff]  ;;  %v68_v19 = vld [vmem:[%s4172_s1 + $0x158] sm:$0xff]  ;;  %101 = vmatpush.msra.mxu0 %v77_v13  ;;  %v70_v20 = vld [vmem:[%s4172_s1 + $0x168] sm:$0xff] }
   0x8   :  { %142 = vmatpush.msra.mxu2 %v75_v9  ;;  %162 = vmatpush.msra.mxu3 %v76_v10  ;;  %v69_v21 = vld [vmem:[%s4172_s1 + $0x160] sm:$0xff]  ;;  %v63_v22 = vld [vmem:[%s4172_s1 + $0x130] sm:$0xff]  ;;  %v64_v23 = vld [vmem:[%s4172_s1 + $0x138] sm:$0xff] }
   0x9   :  { %122 = vmatpush.msra.mxu1 %v74_v16  ;;  %102 = vmatpush.msra.mxu0 %v73_v17  ;;  %v66_v24 = vld [vmem:[%s4172_s1 + $0x148] sm:$0xff]  ;;  %v65_v25 = vld [vmem:[%s4172_s1 + $0x140] sm:$0xff]  ;;  %v59_v26 = vld [vmem:[%s4172_s1 + $0x110] sm:$0xff] }
   0xa   :  { %143 = vmatpush.msra.mxu2 %v71_v14  ;;  %163 = vmatpush.msra.mxu3 %v72_v15  ;;  %v60_v27 = vld [vmem:[%s4172_s1 + $0x118] sm:$0xff]  ;;  %v62_v28 = vld [vmem:[%s4172_s1 + $0x128] sm:$0xff]  ;;  %v61_v29 = vld [vmem:[%s4172_s1 + $0x120] sm:$0xff] }
   0xb   :  { %123 = vmatpush.msra.mxu1 %v70_v20  ;;  %103 = vmatpush.msra.mxu0 %v69_v21  ;;  %v55_v30 = vld [vmem:[%s4172_s1 + $0xf0] sm:$0xff]  ;;  %v56_v31 = vld [vmem:[%s4172_s1 + $0xf8] sm:$0xff]  ;;  %v58_v32 = vld [vmem:[%s4172_s1 + $0x108] sm:$0xff] }
   0xc   :  { %144 = vmatpush.msra.mxu2 %v67_v18  ;;  %164 = vmatpush.msra.mxu3 %v68_v19  ;;  %v57_v33 = vld [vmem:[%s4172_s1 + $0x100] sm:$0xff]  ;;  %v51_v34 = vld [vmem:[%s4172_s1 + $0xd0] sm:$0xff]  ;;  %v52_v35 = vld [vmem:[%s4172_s1 + $0xd8] sm:$0xff] }
   0xd   :  { %124 = vmatpush.msra.mxu1 %v66_v24  ;;  %104 = vmatpush.msra.mxu0 %v65_v25  ;;  %v54_v36 = vld [vmem:[%s4172_s1 + $0xe8] sm:$0xff]  ;;  %v53_v37 = vld [vmem:[%s4172_s1 + $0xe0] sm:$0xff]  ;;  %v47_v38 = vld [vmem:[%s4172_s1 + $0xb0] sm:$0xff] }
   0xe   :  { %145 = vmatpush.msra.mxu2 %v63_v22  ;;  %165 = vmatpush.msra.mxu3 %v64_v23  ;;  %v48_v39 = vld [vmem:[%s4172_s1 + $0xb8] sm:$0xff]  ;;  %v50_v40 = vld [vmem:[%s4172_s1 + $0xc8] sm:$0xff]  ;;  %v49_v41 = vld [vmem:[%s4172_s1 + $0xc0] sm:$0xff] }
   0xf   :  { %125 = vmatpush.msra.mxu1 %v62_v28  ;;  %105 = vmatpush.msra.mxu0 %v61_v29  ;;  %v43_v42 = vld [vmem:[%s4172_s1 + $0x90] sm:$0xff]  ;;  %v44_v43 = vld [vmem:[%s4172_s1 + $0x98] sm:$0xff]  ;;  %v46_v44 = vld [vmem:[%s4172_s1 + $0xa8] sm:$0xff] }
  0x10   :  { %146 = vmatpush.msra.mxu2 %v59_v26  ;;  %166 = vmatpush.msra.mxu3 %v60_v27  ;;  %v45_v45 = vld [vmem:[%s4172_s1 + $0xa0] sm:$0xff]  ;;  %v39_v46 = vld [vmem:[%s4172_s1 + $0x70] sm:$0xff]  ;;  %v40_v47 = vld [vmem:[%s4172_s1 + $0x78] sm:$0xff] }
  0x11   :  { %126 = vmatpush.msra.mxu1 %v58_v32  ;;  %106 = vmatpush.msra.mxu0 %v57_v33  ;;  %v42_v48 = vld [vmem:[%s4172_s1 + $0x88] sm:$0xff]  ;;  %v41_v49 = vld [vmem:[%s4172_s1 + $0x80] sm:$0xff]  ;;  %v35_v50 = vld [vmem:[%s4172_s1 + $0x50] sm:$0xff] }
  0x12   :  { %147 = vmatpush.msra.mxu2 %v55_v30  ;;  %167 = vmatpush.msra.mxu3 %v56_v31  ;;  %v36_v51 = vld [vmem:[%s4172_s1 + $0x58] sm:$0xff]  ;;  %v38_v52 = vld [vmem:[%s4172_s1 + $0x68] sm:$0xff]  ;;  %v37_v53 = vld [vmem:[%s4172_s1 + $0x60] sm:$0xff] }
  0x13   :  { %127 = vmatpush.msra.mxu1 %v54_v36  ;;  %107 = vmatpush.msra.mxu0 %v53_v37  ;;  %v31_v54 = vld [vmem:[%s4172_s1 + $0x30] sm:$0xff]  ;;  %v32_v55 = vld [vmem:[%s4172_s1 + $0x38] sm:$0xff]  ;;  %v34_v56 = vld [vmem:[%s4172_s1 + $0x48] sm:$0xff] }
  0x14   :  { %148 = vmatpush.msra.mxu2 %v51_v34  ;;  %168 = vmatpush.msra.mxu3 %v52_v35  ;;  %v33_v57 = vld [vmem:[%s4172_s1 + $0x40] sm:$0xff]  ;;  %v27_v58 = vld [vmem:[%s4172_s1 + $0x10] sm:$0xff]  ;;  %v28_v59 = vld [vmem:[%s4172_s1 + $0x18] sm:$0xff] }
  0x15   :  { %128 = vmatpush.msra.mxu1 %v50_v40  ;;  %108 = vmatpush.msra.mxu0 %v49_v41  ;;  %v2506_v60 = vld [vmem:[%s4173_s2 + $0x1f0] sm:$0xff]  ;;  %v2511_v61 = vld [vmem:[%s4173_s2 + $0x1f8] sm:$0xff]  ;;  %v30_v62 = vld [vmem:[%s4172_s1 + $0x28] sm:$0xff] }
  0x16   :  { %149 = vmatpush.msra.mxu2 %v47_v38  ;;  %169 = vmatpush.msra.mxu3 %v48_v39  ;;  %v29_v63 = vld [vmem:[%s4172_s1 + $0x20] sm:$0xff]  ;;  %v2522_v0 = vld [vmem:[%s4173_s2 + $0x1d0] sm:$0xff]  ;;  %v2527_v1 = vld [vmem:[%s4173_s2 + $0x1d8] sm:$0xff] }
  0x17   :  { %129 = vmatpush.msra.mxu1 %v46_v44  ;;  %109 = vmatpush.msra.mxu0 %v45_v45  ;;  %v26_v2 = vld [vmem:[%s4172_s1 + $0x8] sm:$0xff]  ;;  %v25_v3 = vld [vmem:[%s4172_s1] sm:$0xff]  ;;  %v2540_v4 = vld [vmem:[%s4173_s2 + $0x1b0] sm:$0xff] }
  0x18   :  { %150 = vmatpush.msra.mxu2 %v43_v42  ;;  %170 = vmatpush.msra.mxu3 %v44_v43  ;;  %v2545_v5 = vld [vmem:[%s4173_s2 + $0x1b8] sm:$0xff]  ;;  %v2552_v6 = vld [vmem:[%s4173_s2 + $0x1e8] sm:$0xff]  ;;  %v2557_v7 = vld [vmem:[%s4173_s2 + $0x1e0] sm:$0xff] }
  0x19   :  { %130 = vmatpush.msra.mxu1 %v42_v48  ;;  %110 = vmatpush.msra.mxu0 %v41_v49  ;;  %v2562_v8 = vld [vmem:[%s4173_s2 + $0x190] sm:$0xff]  ;;  %v2567_v9 = vld [vmem:[%s4173_s2 + $0x198] sm:$0xff]  ;;  %v2574_v10 = vld [vmem:[%s4173_s2 + $0x1c8] sm:$0xff] }
  0x1a   :  { %151 = vmatpush.msra.mxu2 %v39_v46  ;;  %171 = vmatpush.msra.mxu3 %v40_v47  ;;  %v2579_v11 = vld [vmem:[%s4173_s2 + $0x1c0] sm:$0xff]  ;;  %v2586_v12 = vld [vmem:[%s4173_s2 + $0x170] sm:$0xff]  ;;  %v2591_v13 = vld [vmem:[%s4173_s2 + $0x178] sm:$0xff] }
  0x1b   :  { %131 = vmatpush.msra.mxu1 %v38_v52  ;;  %111 = vmatpush.msra.mxu0 %v37_v53  ;;  %v2598_v14 = vld [vmem:[%s4173_s2 + $0x1a8] sm:$0xff]  ;;  %v2603_v15 = vld [vmem:[%s4173_s2 + $0x1a0] sm:$0xff]  ;;  %v2610_v16 = vld [vmem:[%s4173_s2 + $0x150] sm:$0xff] }
  0x1c   :  { %152 = vmatpush.msra.mxu2 %v35_v50  ;;  %172 = vmatpush.msra.mxu3 %v36_v51  ;;  %v2615_v17 = vld [vmem:[%s4173_s2 + $0x158] sm:$0xff]  ;;  %v2622_v18 = vld [vmem:[%s4173_s2 + $0x188] sm:$0xff]  ;;  %v2627_v19 = vld [vmem:[%s4173_s2 + $0x180] sm:$0xff] }
  0x1d   :  { %132 = vmatpush.msra.mxu1 %v34_v56  ;;  %112 = vmatpush.msra.mxu0 %v33_v57  ;;  %v2634_v20 = vld [vmem:[%s4173_s2 + $0x130] sm:$0xff]  ;;  %v2639_v21 = vld [vmem:[%s4173_s2 + $0x138] sm:$0xff]  ;;  %v2646_v22 = vld [vmem:[%s4173_s2 + $0x168] sm:$0xff] }
  0x1e   :  { %153 = vmatpush.msra.mxu2 %v31_v54  ;;  %173 = vmatpush.msra.mxu3 %v32_v55  ;;  %v2651_v23 = vld [vmem:[%s4173_s2 + $0x110] sm:$0xff]  ;;  %v2656_v24 = vld [vmem:[%s4173_s2 + $0x160] sm:$0xff]  ;;  %v2663_v25 = vld [vmem:[%s4173_s2 + $0x118] sm:$0xff] }
  0x1f   :  { %133 = vmatpush.msra.mxu1 %v30_v62  ;;  %113 = vmatpush.msra.mxu0 %v29_v63 }
  0x20   :  { %154 = vmatpush.msra.mxu2 %v27_v58  ;;  %174 = vmatpush.msra.mxu3 %v28_v59 }
  0x21   :  { %134 = vmatpush.msra.mxu1 %v26_v2  ;;  %114 = vmatpush.msra.mxu0 %v25_v3 }
  0x22   :  { %288 = vmatpush.msrb.mxu2 %v2506_v60  ;;  %308 = vmatpush.msrb.mxu3 %v2511_v61 }
  0x23   :  { %268 = vmatpush.msrb.mxu1 %v2552_v6  ;;  %248 = vmatpush.msrb.mxu0 %v2557_v7 }
  0x24   :  { %289 = vmatpush.msrb.mxu2 %v2522_v0  ;;  %309 = vmatpush.msrb.mxu3 %v2527_v1 }
  0x25   :  { %269 = vmatpush.msrb.mxu1 %v2574_v10  ;;  %249 = vmatpush.msrb.mxu0 %v2579_v11 }
  0x26   :  { %290 = vmatpush.msrb.mxu2 %v2540_v4  ;;  %310 = vmatpush.msrb.mxu3 %v2545_v5 }
  0x27   :  { %270 = vmatpush.msrb.mxu1 %v2598_v14  ;;  %250 = vmatpush.msrb.mxu0 %v2603_v15 }
  0x28   :  { %291 = vmatpush.msrb.mxu2 %v2562_v8  ;;  %311 = vmatpush.msrb.mxu3 %v2567_v9 }
  0x29   :  { %271 = vmatpush.msrb.mxu1 %v2622_v18  ;;  %251 = vmatpush.msrb.mxu0 %v2627_v19 }
  0x2a   :  { %292 = vmatpush.msrb.mxu2 %v2586_v12  ;;  %312 = vmatpush.msrb.mxu3 %v2591_v13 }
  0x2c   :  { %293 = vmatpush.msrb.mxu2 %v2610_v16  ;;  %313 = vmatpush.msrb.mxu3 %v2615_v17 }
  0x2d   :  { %11 = vsyncpa [#allocation5], 0  ;;  %v2670_v26 = vld [vmem:[%s4173_s2 + $0x148] sm:$0xff]  ;;  %v2675_v27 = vld [vmem:[%s4173_s2 + $0x140] sm:$0xff]  ;;  %272 = vmatpush.msrb.mxu1 %v2646_v22  ;;  %252 = vmatpush.msrb.mxu0 %v2656_v24  ;;  %v2286_v62 = vmov 0.0   ;;  %vm337_vm0 = vcmask 1042434  }
  0x2e   :  { %294 = vmatpush.msrb.mxu2 %v2634_v20  ;;  %314 = vmatpush.msrb.mxu3 %v2639_v21  ;;  %v2682_v28 = vld [vmem:[%s4173_s2 + $0xf0] sm:$0xff]  ;;  %v2687_v29 = vld [vmem:[%s4173_s2 + $0xf8] sm:$0xff]  ;;  %v2694_v30 = vld [vmem:[%s4173_s2 + $0x128] sm:$0xff]  ;;  %vm335_vm1 = vcmask 1040384   ;;  %vm339_vm2 = vcmask 1041408   ;;  %s2092_s27 = sshll.u32 %s4177_s6, 4  ;;  %s2093_s27 = int_to_ptr.hbm [resolvable:$true] %s2092_s27 }
  0x2f   :  { %v2699_v31 = vld [vmem:[%s4173_s2 + $0x120] sm:$0xff]  ;;  %273 = vmatpush.msrb.mxu1 %v2670_v26  ;;  %253 = vmatpush.msrb.mxu0 %v2675_v27  ;;  %v2706_v32 = vld [vmem:[%s4173_s2 + $0xd0] sm:$0xff]  ;;  %v2711_v33 = vld [vmem:[%s4173_s2 + $0xd8] sm:$0xff] }
  0x30   :  { %295 = vmatpush.msrb.mxu2 %v2651_v23  ;;  %315 = vmatpush.msrb.mxu3 %v2663_v25  ;;  %v2718_v34 = vld [vmem:[%s4173_s2 + $0x108] sm:$0xff]  ;;  %v2723_v35 = vld [vmem:[%s4173_s2 + $0x100] sm:$0xff]  ;;  %v2730_v36 = vld [vmem:[%s4173_s2 + $0xb0] sm:$0xff] }
  0x31   :  { %274 = vmatpush.msrb.mxu1 %v2694_v30  ;;  %254 = vmatpush.msrb.mxu0 %v2699_v31  ;;  %v2735_v37 = vld [vmem:[%s4173_s2 + $0xb8] sm:$0xff]  ;;  %v2742_v38 = vld [vmem:[%s4173_s2 + $0xe8] sm:$0xff]  ;;  %v24_v39 = vld [vmem:[%s4171_s0] sm:$0xff] }
  0x32   :  { %296 = vmatpush.msrb.mxu2 %v2682_v28  ;;  %316 = vmatpush.msrb.mxu3 %v2687_v29  ;;  %v2752_v40 = vld [vmem:[%s4173_s2 + $0x90] sm:$0xff]  ;;  %v2757_v41 = vld [vmem:[%s4173_s2 + $0x98] sm:$0xff]  ;;  %v2764_v42 = vld [vmem:[%s4173_s2 + $0xe0] sm:$0xff] }
  0x33   :  { %275 = vmatpush.msrb.mxu1 %v2718_v34  ;;  %255 = vmatpush.msrb.mxu0 %v2723_v35  ;;  %v2770_v43 = vld [vmem:[%s4173_s2 + $0xc8] sm:$0xff]  ;;  %v2775_v44 = vld [vmem:[%s4173_s2 + $0x70] sm:$0xff]  ;;  %v2782_v45 = vld [vmem:[%s4173_s2 + $0x78] sm:$0xff] }
  0x34   :  { %297 = vmatpush.msrb.mxu2 %v2706_v32  ;;  %317 = vmatpush.msrb.mxu3 %v2711_v33  ;;  %v2787_v46 = vld [vmem:[%s4173_s2 + $0xc0] sm:$0xff]  ;;  %v2793_v47 = vld [vmem:[%s4173_s2 + $0xa8] sm:$0xff]  ;;  %v2798_v48 = vld [vmem:[%s4173_s2 + $0x50] sm:$0xff] }
  0x35   :  { %276 = vmatpush.msrb.mxu1 %v2742_v38  ;;  %155 = vmatmul.f32.vlgmr.msra.gmra.mxu2 %v24_v39  ;;  %v2805_v49 = vld [vmem:[%s4173_s2 + $0x58] sm:$0xff]  ;;  %v2810_v50 = vld [vmem:[%s4173_s2 + $0xa0] sm:$0xff]  ;;  %v2817_v51 = vld [vmem:[%s4173_s2 + $0x88] sm:$0xff] }
  0x36   :  { %298 = vmatpush.msrb.mxu2 %v2730_v36  ;;  %318 = vmatpush.msrb.mxu3 %v2735_v37  ;;  %v2822_v52 = vld [vmem:[%s4173_s2 + $0x30] sm:$0xff]  ;;  %v2829_v53 = vld [vmem:[%s4173_s2 + $0x38] sm:$0xff]  ;;  %v2836_v54 = vld [vmem:[%s4173_s2 + $0x80] sm:$0xff] }
  0x37   :  { %175 = vmatmul.f32.vlgmr.msra.gmra.mxu3 %v24_v39  ;;  %256 = vmatpush.msrb.mxu0 %v2764_v42  ;;  %v2843_v55 = vld [vmem:[%s4173_s2 + $0x68] sm:$0xff]  ;;  %v2848_v56 = vld [vmem:[%s4173_s2 + $0x10] sm:$0xff]  ;;  %v2854_v57 = vld [vmem:[%s4173_s2 + $0x18] sm:$0xff] }
  0x38   :  { %299 = vmatpush.msrb.mxu2 %v2752_v40  ;;  %319 = vmatpush.msrb.mxu3 %v2757_v41  ;;  %4213 = vst [vmem:[#allocation7_spill] sm:$0xff] %v2854_v57  ;;  %v2860_v58 = vld [vmem:[%s4173_s2 + $0x60] sm:$0xff]  ;;  %v2867_v59 = vld [vmem:[%s4173_s2 + $0x48] sm:$0xff] }
  0x39   :  { %277 = vmatpush.msrb.mxu1 %v2770_v43  ;;  %257 = vmatpush.msrb.mxu0 %v2787_v46  ;;  %v2873_v63 = vld [vmem:[%s4173_s2 + $0x40] sm:$0xff]  ;;  %v2879_v2 = vld [vmem:[%s4173_s2 + $0x28] sm:$0xff] }
  0x3a   :  { %300 = vmatpush.msrb.mxu2 %v2775_v44  ;;  %320 = vmatpush.msrb.mxu3 %v2782_v45  ;;  %v2885_v3 = vld [vmem:[%s4173_s2 + $0x20] sm:$0xff] }
  0x3b   :  { %278 = vmatpush.msrb.mxu1 %v2793_v47  ;;  %258 = vmatpush.msrb.mxu0 %v2810_v50 }
  0x3c   :  { %301 = vmatpush.msrb.mxu2 %v2798_v48  ;;  %321 = vmatpush.msrb.mxu3 %v2805_v49 }
  0x3d   :  { %279 = vmatpush.msrb.mxu1 %v2817_v51  ;;  %115 = vmatmul.f32.vlgmr.msra.gmra.mxu0 %v24_v39 }
  0x3e   :  { %302 = vmatpush.msrb.mxu2 %v2822_v52  ;;  %322 = vmatpush.msrb.mxu3 %v2829_v53 }
  0x3f   :  { %135 = vmatmul.f32.vlgmr.msra.gmra.mxu1 %v24_v39  ;;  %259 = vmatpush.msrb.mxu0 %v2836_v54  ;;  %v2892_v39 = vld [vmem:[%s4173_s2 + $0x8] sm:$0xff] }
  0x40   :  { %280 = vmatpush.msrb.mxu1 %v2843_v55  ;;  %303 = vmatpush.msrb.mxu2 %v2848_v56 }
  0x41   :  { %323 = vmatpush.msrb.mxu3 %v2854_v57  ;;  %304 = vmatmul.f32.vlgmr.msrb.gmra.mxu2 %v2286_v62  ;;  %v2899_v57 = vld [vmem:[%s4173_s2] sm:$0xff] }
  0x42   :  { %324 = vmatmul.f32.vlgmr.msrb.gmra.mxu3 %v2286_v62  ;;  %260 = vmatpush.msrb.mxu0 %v2860_v58 }
  0x43   :  { %281 = vmatpush.msrb.mxu1 %v2867_v59  ;;  %520 = vmatpush.msra.mxu2 %v2506_v60 }
  0x44   :  { %261 = vmatpush.msrb.mxu0 %v2873_v63  ;;  %540 = vmatpush.msra.mxu3 %v2511_v61 }
  0x45   :  { %282 = vmatpush.msrb.mxu1 %v2879_v2  ;;  %521 = vmatpush.msra.mxu2 %v2522_v0 }
  0x46   :  { %262 = vmatpush.msrb.mxu0 %v2885_v3  ;;  %541 = vmatpush.msra.mxu3 %v2527_v1 }
  0x47   :  { %283 = vmatpush.msrb.mxu1 %v2892_v39  ;;  %522 = vmatpush.msra.mxu2 %v2540_v4 }
  0x48   :  { %284 = vmatmul.f32.vlgmr.msrb.gmra.mxu1 %v2286_v62  ;;  %263 = vmatpush.msrb.mxu0 %v2899_v57 }
  0x49   :  { %264 = vmatmul.f32.vlgmr.msrb.gmra.mxu0 %v2286_v62  ;;  %500 = vmatpush.msra.mxu1 %v2552_v6  ;;  %v4214_v62 = vld [vmem:[#allocation7_spill] sm:$0xff] }
  0x4a   :  { %480 = vmatpush.msra.mxu0 %v2557_v7  ;;  %542 = vmatpush.msra.mxu3 %v2545_v5 }
  0x4b   :  { %501 = vmatpush.msra.mxu1 %v2574_v10  ;;  %523 = vmatpush.msra.mxu2 %v2562_v8 }
  0x4c   :  { %481 = vmatpush.msra.mxu0 %v2579_v11  ;;  %543 = vmatpush.msra.mxu3 %v2567_v9 }
  0x4d   :  { %502 = vmatpush.msra.mxu1 %v2598_v14  ;;  %524 = vmatpush.msra.mxu2 %v2586_v12 }
  0x4e   :  { %482 = vmatpush.msra.mxu0 %v2603_v15  ;;  %544 = vmatpush.msra.mxu3 %v2591_v13 }
  0x4f   :  { %503 = vmatpush.msra.mxu1 %v2622_v18  ;;  %525 = vmatpush.msra.mxu2 %v2610_v16 }
  0x50   :  { %483 = vmatpush.msra.mxu0 %v2627_v19  ;;  %545 = vmatpush.msra.mxu3 %v2615_v17 }
  0x51   :  { %504 = vmatpush.msra.mxu1 %v2646_v22  ;;  %526 = vmatpush.msra.mxu2 %v2634_v20 }
  0x52   :  { %484 = vmatpush.msra.mxu0 %v2656_v24  ;;  %546 = vmatpush.msra.mxu3 %v2639_v21 }
  0x53   :  { %505 = vmatpush.msra.mxu1 %v2670_v26  ;;  %527 = vmatpush.msra.mxu2 %v2651_v23 }
  0x54   :  { %485 = vmatpush.msra.mxu0 %v2675_v27  ;;  %547 = vmatpush.msra.mxu3 %v2663_v25 }
  0x55   :  { %506 = vmatpush.msra.mxu1 %v2694_v30  ;;  %528 = vmatpush.msra.mxu2 %v2682_v28 }
  0x56   :  { %486 = vmatpush.msra.mxu0 %v2699_v31  ;;  %548 = vmatpush.msra.mxu3 %v2687_v29 }
  0x57   :  { %507 = vmatpush.msra.mxu1 %v2718_v34  ;;  %529 = vmatpush.msra.mxu2 %v2706_v32 }
  0x58   :  { %487 = vmatpush.msra.mxu0 %v2723_v35  ;;  %549 = vmatpush.msra.mxu3 %v2711_v33 }
  0x59   :  { %508 = vmatpush.msra.mxu1 %v2742_v38  ;;  %530 = vmatpush.msra.mxu2 %v2730_v36 }
  0x5a   :  { %488 = vmatpush.msra.mxu0 %v2764_v42  ;;  %550 = vmatpush.msra.mxu3 %v2735_v37 }
  0x5b   :  { %509 = vmatpush.msra.mxu1 %v2770_v43  ;;  %531 = vmatpush.msra.mxu2 %v2752_v40 }
  0x5c   :  { %489 = vmatpush.msra.mxu0 %v2787_v46  ;;  %551 = vmatpush.msra.mxu3 %v2757_v41 }
  0x5d   :  { %510 = vmatpush.msra.mxu1 %v2793_v47  ;;  %532 = vmatpush.msra.mxu2 %v2775_v44 }
  0x5e   :  { %490 = vmatpush.msra.mxu0 %v2810_v50  ;;  %552 = vmatpush.msra.mxu3 %v2782_v45 }
  0x5f   :  { %511 = vmatpush.msra.mxu1 %v2817_v51  ;;  %533 = vmatpush.msra.mxu2 %v2798_v48 }
  0x60   :  { %491 = vmatpush.msra.mxu0 %v2836_v54  ;;  %553 = vmatpush.msra.mxu3 %v2805_v49 }
  0x61   :  { %512 = vmatpush.msra.mxu1 %v2843_v55  ;;  %534 = vmatpush.msra.mxu2 %v2822_v52 }
  0x62   :  { %492 = vmatpush.msra.mxu0 %v2860_v58  ;;  %554 = vmatpush.msra.mxu3 %v2829_v53 }
  0x63   :  { %513 = vmatpush.msra.mxu1 %v2867_v59  ;;  %535 = vmatpush.msra.mxu2 %v2848_v56 }
  0x64   :  { %493 = vmatpush.msra.mxu0 %v2873_v63  ;;  %555 = vmatpush.msra.mxu3 %v4214_v62 }
  0x65   :  { %514 = vmatpush.msra.mxu1 %v2879_v2  ;;  %749 = vmatpush.msrb.mxu2 %v2506_v60  ;;  %v89_v60 = vld [vmem:[%s4174_s3] sm:$0xf] }
  0x66   :  { %494 = vmatpush.msra.mxu0 %v2885_v3  ;;  %769 = vmatpush.msrb.mxu3 %v2511_v61  ;;  %v93_v61 = vperm.slane %v89_v60, 2 }
  0x67   :  { %515 = vmatpush.msra.mxu1 %v2892_v39  ;;  %750 = vmatpush.msrb.mxu2 %v2522_v0  ;;  %v91_v0 = vperm.slane %v89_v60, 0 }
  0x68   :  { %495 = vmatpush.msra.mxu0 %v2899_v57  ;;  %770 = vmatpush.msrb.mxu3 %v2527_v1  ;;  %v94_v1 = vperm.slane %v89_v60, 3 }
  0x69   :  { %729 = vmatpush.msrb.mxu1 %v2552_v6  ;;  %751 = vmatpush.msrb.mxu2 %v2540_v4  ;;  %v92_v4 = vperm.slane %v89_v60, 1 }
  0x6a   :  { %709 = vmatpush.msrb.mxu0 %v2557_v7  ;;  %771 = vmatpush.msrb.mxu3 %v2545_v5 }
  0x6b   :  { %730 = vmatpush.msrb.mxu1 %v2574_v10  ;;  %752 = vmatpush.msrb.mxu2 %v2562_v8 }
  0x6c   :  { %710 = vmatpush.msrb.mxu0 %v2579_v11  ;;  %772 = vmatpush.msrb.mxu3 %v2567_v9 }
  0x6d   :  { %731 = vmatpush.msrb.mxu1 %v2598_v14  ;;  %753 = vmatpush.msrb.mxu2 %v2586_v12 }
  0x6e   :  { %711 = vmatpush.msrb.mxu0 %v2603_v15  ;;  %773 = vmatpush.msrb.mxu3 %v2591_v13 }
  0x6f   :  { %732 = vmatpush.msrb.mxu1 %v2622_v18  ;;  %754 = vmatpush.msrb.mxu2 %v2610_v16 }
  0x70   :  { %712 = vmatpush.msrb.mxu0 %v2627_v19  ;;  %774 = vmatpush.msrb.mxu3 %v2615_v17 }
  0x71   :  { %733 = vmatpush.msrb.mxu1 %v2646_v22  ;;  %755 = vmatpush.msrb.mxu2 %v2634_v20 }
  0x72   :  { %713 = vmatpush.msrb.mxu0 %v2656_v24  ;;  %775 = vmatpush.msrb.mxu3 %v2639_v21 }
  0x73   :  { %734 = vmatpush.msrb.mxu1 %v2670_v26  ;;  %756 = vmatpush.msrb.mxu2 %v2651_v23 }
  0x74   :  { %714 = vmatpush.msrb.mxu0 %v2675_v27  ;;  %776 = vmatpush.msrb.mxu3 %v2663_v25 }
  0x75   :  { %735 = vmatpush.msrb.mxu1 %v2694_v30  ;;  %757 = vmatpush.msrb.mxu2 %v2682_v28 }
  0x76   :  { %715 = vmatpush.msrb.mxu0 %v2699_v31  ;;  %777 = vmatpush.msrb.mxu3 %v2687_v29 }
  0x77   :  { %736 = vmatpush.msrb.mxu1 %v2718_v34  ;;  %758 = vmatpush.msrb.mxu2 %v2706_v32 }
  0x78   :  { %716 = vmatpush.msrb.mxu0 %v2723_v35  ;;  %778 = vmatpush.msrb.mxu3 %v2711_v33 }
  0x79   :  { %737 = vmatpush.msrb.mxu1 %v2742_v38  ;;  %759 = vmatpush.msrb.mxu2 %v2730_v36 }
  0x7a   :  { %717 = vmatpush.msrb.mxu0 %v2764_v42  ;;  %779 = vmatpush.msrb.mxu3 %v2735_v37 }
  0x7b   :  { %738 = vmatpush.msrb.mxu1 %v2770_v43  ;;  %760 = vmatpush.msrb.mxu2 %v2752_v40 }
  0x7c   :  { %718 = vmatpush.msrb.mxu0 %v2787_v46  ;;  %780 = vmatpush.msrb.mxu3 %v2757_v41 }
  0x7d   :  { %739 = vmatpush.msrb.mxu1 %v2793_v47  ;;  %761 = vmatpush.msrb.mxu2 %v2775_v44 }
  0x7e   :  { %719 = vmatpush.msrb.mxu0 %v2810_v50  ;;  %781 = vmatpush.msrb.mxu3 %v2782_v45 }
  0x7f   :  { %740 = vmatpush.msrb.mxu1 %v2817_v51  ;;  %762 = vmatpush.msrb.mxu2 %v2798_v48 }
  0x80   :  { %720 = vmatpush.msrb.mxu0 %v2836_v54  ;;  %782 = vmatpush.msrb.mxu3 %v2805_v49 }
  0x81   :  { %741 = vmatpush.msrb.mxu1 %v2843_v55  ;;  %763 = vmatpush.msrb.mxu2 %v2822_v52 }
  0x82   :  { %721 = vmatpush.msrb.mxu0 %v2860_v58  ;;  %783 = vmatpush.msrb.mxu3 %v2829_v53 }
  0x83   :  { %742 = vmatpush.msrb.mxu1 %v2867_v59  ;;  %764 = vmatpush.msrb.mxu2 %v2848_v56 }
  0x84   :  { %722 = vmatpush.msrb.mxu0 %v2873_v63  ;;  %784 = vmatpush.msrb.mxu3 %v4214_v62 }
  0x85   :  { %743 = vmatpush.msrb.mxu1 %v2879_v2 }
  0x86   :  { %723 = vmatpush.msrb.mxu0 %v2885_v3 }
  0x87   :  { %744 = vmatpush.msrb.mxu1 %v2892_v39 }
  0x88   :  { %724 = vmatpush.msrb.mxu0 %v2899_v57 }
  0xb8   :  { %v156_v5 = vpop.f32.mrf.mxu2 }
  0xb9   :  { %v157_v6 = vadd.f32 %v156_v5, %v93_v61 }
  0xba   :  { %v116_v7 = vpop.f32.mrf.mxu0  ;;  %v176_v8 = vpop.f32.mrf.mxu3 }
  0xbb   :  { %v117_v9 = vadd.f32 %v116_v7, %v91_v0  ;;  %181 = vst [vmem:[#allocation2 + $0x10] sm:$0xff] %v157_v6  ;;  %v177_v11 = vadd.f32 %v176_v8, %v94_v1 }
  0xbc   :  { %v136_v10 = vpop.f32.mrf.mxu1 }
  0xbd   :  { %v137_v12 = vadd.f32 %v136_v10, %v92_v4  ;;  %179 = vst [vmem:[#allocation2] sm:$0xff] %v117_v9 }
  0xbe   :  { %182 = vst [vmem:[#allocation2 + $0x18] sm:$0xff] %v177_v11 }
  0xbf   :  { %180 = vst [vmem:[#allocation2 + $0x8] sm:$0xff] %v137_v12 }
  0xc4   :  { %v305_v13 = vpop.f32.mrf.mxu2 }
  0xc5   :  { %v285_v14 = vpop.f32.mrf.mxu1  ;;  %v333_v15 = vrot.slane %v305_v13, 6  ;;  %v325_v16 = vpop.f32.mrf.mxu3 }
  0xc6   :  { %v332_v17 = vrot.slane %v285_v14, 7  ;;  %v334_v18 = vrot.slane %v325_v16, 5  ;;  %v265_v19 = vpop.f32.mrf.mxu0  ;;  %v183_v22 = vld [vmem:[#allocation2] ss:$8 sm:$0xf] }
  0xc8   :  { %v338_v20 = vsel %vm337_vm0, %v333_v15, %v334_v18  ;;  %v336_v21 = vsel %vm335_vm1, %v265_v19, %v332_v17  ;;  %v415_v18 = vld [vmem:[#allocation2 + $0x1] ss:$8 sm:$0xf] }
  0xc9   :  { %v340_v23 = vsel %vm339_vm2, %v336_v21, %v338_v20 }
  0xca   :  { %v342_v24 = vadd.f32 %v340_v23, %v183_v22 }
  0xcc   :  { %v2101_v25 = vmul.f32 -1.442695, %v342_v24  ;;  %v363_v26 = vrot.slane %v342_v24, 1  ;;  %v387_v27 = vrot.slane %v342_v24, 3  ;;  %v384_v41 = vrot.slane %v342_v24, 2 }
  0xce   :  { %2128 = vpow2.f32 %v2101_v25  ;;  %v2102_v28 = vmul.f32 -1.442695, %v363_v26  ;;  %v2103_v29 = vmul.f32 -1.442695, %v387_v27 }
  0xd0   :  { %2130 = vpow2.f32 %v2102_v28 }
  0xd1   :  { %2132 = vpow2.f32 %v2103_v29 }
  0xd4   :  { %v2129_v30 = vpop.eup %2128 }
  0xd5   :  { %v346_v31 = vadd.f32 1.0, %v2129_v30 }
  0xd6   :  { %v2131_v32 = vpop.eup %2130 }
  0xd7   :  { %v2133_v33 = vpop.eup %2132  ;;  %2134 = vrcp.f32 %v346_v31  ;;  %v368_v34 = vadd.f32 1.0, %v2131_v32  ;;  %v358_v45 = vand.u32 2147483648, %v346_v31  ;;  %v356_v47 = vand.u32 2147483647, %v346_v31 }
  0xd8   :  { %v392_v35 = vadd.f32 1.0, %v2133_v33  ;;  %vm352_vm4 = vweird.f32 %v346_v31 }
  0xd9   :  { %2136 = vrcp.f32 %v368_v34  ;;  %v380_v50 = vand.u32 2147483648, %v368_v34  ;;  %v378_v52 = vand.u32 2147483647, %v368_v34  ;;  %v359_v54 = vor.u32 1.1754944e-38, %v358_v45 }
  0xda   :  { %2138 = vrcp.f32 %v392_v35  ;;  %vm357_vm7 = vcmp.eq.f32.partialorder %v356_v47, 8.507059e+37  ;;  %vm374_vm8 = vweird.f32 %v368_v34  ;;  %v404_v0 = vand.u32 2147483648, %v392_v35 }
  0xdb   :  { %2140 = vtanh.f32 %v384_v41  ;;  %v381_v58 = vor.u32 1.1754944e-38, %v380_v50  ;;  %vm379_vm10 = vcmp.eq.f32.partialorder %v378_v52, 8.507059e+37  ;;  %vm398_vm12 = vweird.f32 %v392_v35 }
  0xdc   :  { %v402_v1 = vand.u32 2147483647, %v392_v35  ;;  %v405_v5 = vor.u32 1.1754944e-38, %v404_v0 }
  0xdd   :  { %v2135_v36 = vpop.eup %2134 }
  0xde   :  { %v348_v37 = vmul.f32 %v2135_v36, %v346_v31  ;;  %vm353_vm3 = vweird.f32 %v2135_v36  ;;  %vm403_vm14 = vcmp.eq.f32.partialorder %v402_v1, 8.507059e+37 }
  0xdf   :  { %v2137_v38 = vpop.eup %2136  ;;  %vm354_vm5 = vmor %vm352_vm4, %vm353_vm3 }
  0xe0   :  { %v349_v40 = vsub.f32 1.0, %v348_v37  ;;  %v2139_v42 = vpop.eup %2138  ;;  %v370_v43 = vmul.f32 %v2137_v38, %v368_v34  ;;  %vm375_vm6 = vweird.f32 %v2137_v38 }
  0xe1   :  { %v394_v46 = vmul.f32 %v2139_v42, %v392_v35  ;;  %vm376_vm9 = vmor %vm374_vm8, %vm375_vm6  ;;  %v2141_v63 = vpop.eup %2140  ;;  %vm399_vm11 = vweird.f32 %v2139_v42 }
  0xe2   :  { %v350_v44 = vmul.f32 %v2135_v36, %v349_v40  ;;  %v371_v48 = vsub.f32 1.0, %v370_v43  ;;  %vm400_vm13 = vmor %vm398_vm12, %vm399_vm11 }
  0xe3   :  { %v395_v55 = vsub.f32 1.0, %v394_v46 }
  0xe4   :  { %v351_v49 = vadd.f32 %v2135_v36, %v350_v44  ;;  %v372_v51 = vmul.f32 %v2137_v38, %v371_v48 }
  0xe5   :  { %v396_v3 = vmul.f32 %v2139_v42, %v395_v55 }
  0xe6   :  { %v355_v53 = vsel %vm354_vm5, %v2135_v36, %v351_v49  ;;  %v373_v56 = vadd.f32 %v2137_v38, %v372_v51 }
  0xe7   :  { %v360_v57 = vsel %vm357_vm7, %v359_v54, %v355_v53  ;;  %v397_v61 = vadd.f32 %v2139_v42, %v396_v3 }
  0xe8   :  { %v377_v59 = vsel %vm376_vm9, %v2137_v38, %v373_v56  ;;  %v409_v39 = vmul.f32 %v2141_v63, %v360_v57 }
  0xe9   :  { %v382_v2 = vsel %vm379_vm10, %v381_v58, %v377_v59  ;;  %v401_v4 = vsel %vm400_vm13, %v2139_v42, %v397_v61 }
  0xea   :  { %v408_v62 = vmul.f32 0.0, %v382_v2  ;;  %v406_v7 = vsel %vm403_vm14, %v405_v5, %v401_v4 }
  0xec   :  { %v3036_v60 = vadd.f32 %v409_v39, %v408_v62 }
  0xee   :  { %2142 = vtanh.f32 %v3036_v60 }
  0xf4   :  { %v2143_v6 = vpop.eup %2142 }
  0xf5   :  { %v412_v8 = vmul.f32 %v2143_v6, %v406_v7  ;;  %v3054_v6 = vld [vmem:[%s4173_s2 + $0x1e8] sm:$0xff]  ;;  %v3059_v7 = vld [vmem:[%s4173_s2 + $0x1f0] sm:$0xff] }
  0xf7   :  { %413 = vst [vmem:[#allocation3] sm:$0x1] %v412_v8  ;;  %496 = vmatmul.f32.vlgmr.msra.gmra.mxu0 %v412_v8  ;;  %516 = vmatmul.f32.vlgmr.msra.gmra.mxu1 %v412_v8 }
  0xf8   :  { %536 = vmatmul.f32.vlgmr.msra.gmra.mxu2 %v412_v8  ;;  %556 = vmatmul.f32.vlgmr.msra.gmra.mxu3 %v412_v8  ;;  %v3066_v8 = vld [vmem:[%s4173_s2 + $0x1f8] sm:$0xff] }
  0xf9   :  { %958 = vmatpush.msra.mxu1 %v3054_v6  ;;  %4215 = vst [vmem:[#allocation7_spill] sm:$0xff] %v3066_v8  ;;  %978 = vmatpush.msra.mxu2 %v3059_v7 }
  0xfa   :  { %998 = vmatpush.msra.mxu3 %v3066_v8 }
 0x174   :  { %v517_v9 = vpop.f32.mrf.mxu1  ;;  %v497_v15 = vpop.f32.mrf.mxu0 }
 0x175   :  { %v564_v10 = vrot.slane %v517_v9, 7  ;;  %v3073_v9 = vld [vmem:[%s4173_s2 + $0x1c0] sm:$0xff] }
 0x176   :  { %4216 = vst [vmem:[#allocation8_spill] sm:$0xff] %v3073_v9 }
 0x177   :  { %v567_v16 = vsel %vm335_vm1, %v497_v15, %v564_v10  ;;  %v3078_v10 = vld [vmem:[%s4173_s2 + $0x1c8] sm:$0xff]  ;;  %v3107_v15 = vld [vmem:[%s4173_s2 + $0x1b0] sm:$0xff] }
 0x178   :  { %959 = vmatpush.msra.mxu1 %v3078_v10  ;;  %4220 = vst [vmem:[#allocation12_spill] sm:$0xff] %v3107_v15 }
 0x17b   :  { %v537_v11 = vpop.f32.mrf.mxu2  ;;  %v557_v12 = vpop.f32.mrf.mxu3 }
 0x17c   :  { %v565_v13 = vrot.slane %v537_v11, 6  ;;  %v566_v14 = vrot.slane %v557_v12, 5  ;;  %v3083_v11 = vld [vmem:[%s4173_s2 + $0x1d0] sm:$0xff]  ;;  %v3090_v12 = vld [vmem:[%s4173_s2 + $0x1d8] sm:$0xff] }
 0x17d   :  { %4217 = vst [vmem:[#allocation9_spill] sm:$0xff] %v3083_v11  ;;  %979 = vmatpush.msra.mxu2 %v3083_v11  ;;  %999 = vmatpush.msra.mxu3 %v3090_v12 }
 0x17e   :  { %v568_v17 = vsel %vm337_vm0, %v565_v13, %v566_v14  ;;  %4218 = vst [vmem:[#allocation10_spill] sm:$0xff] %v3090_v12  ;;  %v3097_v13 = vld [vmem:[%s4173_s2 + $0x1a0] sm:$0xff]  ;;  %v3102_v14 = vld [vmem:[%s4173_s2 + $0x1a8] sm:$0xff] }
 0x17f   :  { %v569_v19 = vsel %vm339_vm2, %v567_v16, %v568_v17  ;;  %4219 = vst [vmem:[#allocation11_spill] sm:$0xff] %v3097_v13  ;;  %960 = vmatpush.msra.mxu1 %v3102_v14  ;;  %v3114_v16 = vld [vmem:[%s4173_s2 + $0x1b8] sm:$0xff]  ;;  %980 = vmatpush.msra.mxu2 %v3107_v15  ;;  %v3121_v17 = vld [vmem:[%s4173_s2 + $0x180] sm:$0xff] }
 0x180   :  { %v571_v20 = vadd.f32 %v569_v19, %v415_v18  ;;  %4221 = vst [vmem:[#allocation13_spill] sm:$0xff] %v3114_v16  ;;  %1000 = vmatpush.msra.mxu3 %v3114_v16  ;;  %v3126_v18 = vld [vmem:[%s4173_s2 + $0x188] sm:$0xff]  ;;  %v3131_v19 = vld [vmem:[%s4173_s2 + $0x190] sm:$0xff] }
 0x181   :  { %4222 = vst [vmem:[#allocation14_spill] sm:$0xff] %v3126_v18  ;;  %961 = vmatpush.msra.mxu1 %v3126_v18  ;;  %981 = vmatpush.msra.mxu2 %v3131_v19 }
 0x182   :  { %v2104_v21 = vmul.f32 -1.442695, %v571_v20  ;;  %v592_v22 = vrot.slane %v571_v20, 1  ;;  %v616_v23 = vrot.slane %v571_v20, 3  ;;  %v613_v35 = vrot.slane %v571_v20, 2  ;;  %v3138_v20 = vld [vmem:[%s4173_s2 + $0x198] sm:$0xff] }
 0x183   :  { %4223 = vst [vmem:[#allocation15_spill] sm:$0xff] %v3138_v20  ;;  %1001 = vmatpush.msra.mxu3 %v3138_v20 }
 0x184   :  { %2144 = vpow2.f32 %v2104_v21  ;;  %v2105_v24 = vmul.f32 -1.442695, %v592_v22  ;;  %v2106_v25 = vmul.f32 -1.442695, %v616_v23  ;;  %v3145_v21 = vld [vmem:[%s4173_s2 + $0x160] sm:$0xff]  ;;  %v3150_v22 = vld [vmem:[%s4173_s2 + $0x168] sm:$0xff] }
 0x185   :  { %4224 = vst [vmem:[#allocation16_spill] sm:$0xff] %v3145_v21  ;;  %v3155_v23 = vld [vmem:[%s4173_s2 + $0x170] sm:$0xff]  ;;  %962 = vmatpush.msra.mxu1 %v3150_v22 }
 0x186   :  { %2146 = vpow2.f32 %v2105_v24  ;;  %4225 = vst [vmem:[#allocation17_spill] sm:$0xff] %v3150_v22  ;;  %982 = vmatpush.msra.mxu2 %v3155_v23 }
 0x187   :  { %2148 = vpow2.f32 %v2106_v25  ;;  %v3162_v25 = vld [vmem:[%s4173_s2 + $0x178] sm:$0xff] }
 0x188   :  { %1002 = vmatpush.msra.mxu3 %v3162_v25 }
 0x18a   :  { %v2145_v26 = vpop.eup %2144 }
 0x18b   :  { %v575_v27 = vadd.f32 1.0, %v2145_v26  ;;  %v3169_v26 = vld [vmem:[%s4173_s2 + $0x140] sm:$0xff] }
 0x18c   :  { %v2147_v28 = vpop.eup %2146 }
 0x18d   :  { %v2149_v29 = vpop.eup %2148  ;;  %2150 = vrcp.f32 %v575_v27  ;;  %v597_v30 = vadd.f32 1.0, %v2147_v28  ;;  %v587_v40 = vand.u32 2147483648, %v575_v27  ;;  %v585_v44 = vand.u32 2147483647, %v575_v27  ;;  %v3179_v28 = vld [vmem:[%s4173_s2 + $0x150] sm:$0xff] }
 0x18e   :  { %v621_v31 = vadd.f32 1.0, %v2149_v29  ;;  %vm581_vm3 = vweird.f32 %v575_v27  ;;  %v3186_v29 = vld [vmem:[%s4173_s2 + $0x158] sm:$0xff]  ;;  %983 = vmatpush.msra.mxu2 %v3179_v28 }
 0x18f   :  { %2152 = vrcp.f32 %v597_v30  ;;  %v609_v45 = vand.u32 2147483648, %v597_v30  ;;  %v607_v48 = vand.u32 2147483647, %v597_v30  ;;  %v588_v49 = vor.u32 1.1754944e-38, %v587_v40  ;;  %1003 = vmatpush.msra.mxu3 %v3186_v29  ;;  %v3225_v40 = vld [vmem:[%s4173_s2 + $0x110] sm:$0xff] }
 0x190   :  { %2154 = vrcp.f32 %v621_v31  ;;  %vm586_vm6 = vcmp.eq.f32.partialorder %v585_v44, 8.507059e+37  ;;  %vm603_vm7 = vweird.f32 %v597_v30  ;;  %v633_v39 = vand.u32 2147483648, %v621_v31  ;;  %v3237_v44 = vld [vmem:[%s4173_s2 + $0xe0] sm:$0xff] }
 0x191   :  { %2156 = vtanh.f32 %v613_v35  ;;  %v610_v54 = vor.u32 1.1754944e-38, %v609_v45  ;;  %vm608_vm9 = vcmp.eq.f32.partialorder %v607_v48, 8.507059e+37  ;;  %vm627_vm11 = vweird.f32 %v621_v31  ;;  %v3213_v35 = vld [vmem:[%s4173_s2 + $0x100] sm:$0xff]  ;;  %v3242_v45 = vld [vmem:[%s4173_s2 + $0xe8] sm:$0xff]  ;;  %v3254_v48 = vld [vmem:[%s4173_s2 + $0xf8] sm:$0xff] }
 0x192   :  { %v631_v62 = vand.u32 2147483647, %v621_v31  ;;  %v634_v0 = vor.u32 1.1754944e-38, %v633_v39 }
 0x193   :  { %v2151_v32 = vpop.eup %2150 }
 0x194   :  { %v577_v33 = vmul.f32 %v2151_v32, %v575_v27  ;;  %vm582_vm15 = vweird.f32 %v2151_v32  ;;  %vm632_vm13 = vcmp.eq.f32.partialorder %v631_v62, 8.507059e+37  ;;  %v3174_v27 = vld [vmem:[%s4173_s2 + $0x148] sm:$0xff] }
 0x195   :  { %v2153_v34 = vpop.eup %2152  ;;  %vm583_vm5 = vmor %vm581_vm3, %vm582_vm15  ;;  %4226 = vst [vmem:[#allocation18_spill] sm:$0xff] %v3174_v27  ;;  %963 = vmatpush.msra.mxu1 %v3174_v27 }
 0x196   :  { %v2155_v36 = vpop.eup %2154  ;;  %v578_v37 = vsub.f32 1.0, %v577_v33  ;;  %v599_v38 = vmul.f32 %v2153_v34, %v597_v30  ;;  %vm604_vm4 = vweird.f32 %v2153_v34  ;;  %v3191_v30 = vld [vmem:[%s4173_s2 + $0x120] sm:$0xff]  ;;  %v3203_v33 = vld [vmem:[%s4173_s2 + $0x130] sm:$0xff] }
 0x197   :  { %v623_v41 = vmul.f32 %v2155_v36, %v621_v31  ;;  %vm605_vm8 = vmor %vm603_vm7, %vm604_vm4  ;;  %v2157_v56 = vpop.eup %2156  ;;  %vm628_vm10 = vweird.f32 %v2155_v36  ;;  %v3196_v31 = vld [vmem:[%s4173_s2 + $0x128] sm:$0xff]  ;;  %984 = vmatpush.msra.mxu2 %v3203_v33 }
 0x198   :  { %v600_v42 = vsub.f32 1.0, %v599_v38  ;;  %v579_v43 = vmul.f32 %v2151_v32, %v578_v37  ;;  %vm629_vm12 = vmor %vm627_vm11, %vm628_vm10  ;;  %964 = vmatpush.msra.mxu1 %v3196_v31  ;;  %v3220_v38 = vld [vmem:[%s4173_s2 + $0x108] sm:$0xff] }
 0x199   :  { %v624_v50 = vsub.f32 1.0, %v623_v41  ;;  %v3230_v41 = vld [vmem:[%s4173_s2 + $0x118] sm:$0xff]  ;;  %985 = vmatpush.msra.mxu2 %v3225_v40 }
 0x19a   :  { %v580_v46 = vadd.f32 %v2151_v32, %v579_v43  ;;  %v601_v47 = vmul.f32 %v2153_v34, %v600_v42  ;;  %965 = vmatpush.msra.mxu1 %v3220_v38 }
 0x19b   :  { %v625_v58 = vmul.f32 %v2155_v36, %v624_v50 }
 0x19c   :  { %v584_v51 = vsel %vm583_vm5, %v2151_v32, %v580_v46  ;;  %v602_v52 = vadd.f32 %v2153_v34, %v601_v47  ;;  %v3249_v47 = vld [vmem:[%s4173_s2 + $0xf0] sm:$0xff]  ;;  %966 = vmatpush.msra.mxu1 %v3242_v45 }
 0x19d   :  { %v589_v53 = vsel %vm586_vm6, %v588_v49, %v584_v51  ;;  %v626_v3 = vadd.f32 %v2155_v36, %v625_v58  ;;  %v3263_v51 = vld [vmem:[%s4173_s2 + $0xc0] sm:$0xff]  ;;  %986 = vmatpush.msra.mxu2 %v3249_v47 }
 0x19e   :  { %v606_v55 = vsel %vm605_vm8, %v2153_v34, %v602_v52  ;;  %v638_v63 = vmul.f32 %v2157_v56, %v589_v53  ;;  %v3208_v34 = vld [vmem:[%s4173_s2 + $0x138] sm:$0xff]  ;;  %v3268_v52 = vld [vmem:[%s4173_s2 + $0xc8] sm:$0xff]  ;;  %v3290_v58 = vld [vmem:[%s4173_s2 + $0xa0] sm:$0xff] }
 0x19f   :  { %v611_v57 = vsel %vm608_vm9, %v610_v54, %v606_v55  ;;  %v630_v61 = vsel %vm629_vm12, %v2155_v36, %v626_v3  ;;  %1004 = vmatpush.msra.mxu3 %v3208_v34  ;;  %v644_v53 = vld [vmem:[#allocation2 + $0x2] ss:$8 sm:$0xf]  ;;  %967 = vmatpush.msra.mxu1 %v3268_v52 }
 0x1a0   :  { %v637_v59 = vmul.f32 %v611_v57, %v3036_v60  ;;  %v635_v4 = vsel %vm632_vm13, %v634_v0, %v630_v61  ;;  %v3049_v60 = vld [vmem:[%s4173_s2 + $0x1e0] sm:$0xff]  ;;  %v3276_v55 = vld [vmem:[%s4173_s2 + $0xd0] sm:$0xff]  ;;  %v3281_v56 = vld [vmem:[%s4173_s2 + $0xd8] sm:$0xff] }
 0x1a1   :  { %938 = vmatpush.msra.mxu0 %v3049_v60  ;;  %1005 = vmatpush.msra.mxu3 %v3230_v41  ;;  %v3307_v3 = vld [vmem:[%s4173_s2 + $0xb8] sm:$0xff]  ;;  %v3317_v0 = vld [vmem:[%s4173_s2 + $0x80] sm:$0xff] }
 0x1a2   :  { %v3043_v2 = vadd.f32 %v638_v63, %v637_v59  ;;  %v3295_v59 = vld [vmem:[%s4173_s2 + $0xa8] sm:$0xff]  ;;  %v3302_v63 = vld [vmem:[%s4173_s2 + $0xb0] sm:$0xff]  ;;  %987 = vmatpush.msra.mxu2 %v3276_v55 }
 0x1a3   :  { %939 = vmatpush.msra.mxu0 %v3073_v9  ;;  %1006 = vmatpush.msra.mxu3 %v3254_v48 }
 0x1a4   :  { %2158 = vtanh.f32 %v3043_v2  ;;  %968 = vmatpush.msra.mxu1 %v3295_v59  ;;  %988 = vmatpush.msra.mxu2 %v3302_v63 }
 0x1a5   :  { %940 = vmatpush.msra.mxu0 %v3097_v13  ;;  %1007 = vmatpush.msra.mxu3 %v3281_v56 }
 0x1a7   :  { %941 = vmatpush.msra.mxu0 %v3121_v17  ;;  %1008 = vmatpush.msra.mxu3 %v3307_v3 }
 0x1a9   :  { %942 = vmatpush.msra.mxu0 %v3145_v21 }
 0x1aa   :  { %v2159_v1 = vpop.eup %2158 }
 0x1ab   :  { %v641_v5 = vmul.f32 %v2159_v1, %v635_v4  ;;  %943 = vmatpush.msra.mxu0 %v3169_v26  ;;  %v3322_v1 = vld [vmem:[%s4173_s2 + $0x88] sm:$0xff]  ;;  %v3329_v4 = vld [vmem:[%s4173_s2 + $0x90] sm:$0xff] }
 0x1ac   :  { %969 = vmatpush.msra.mxu1 %v3322_v1  ;;  %989 = vmatpush.msra.mxu2 %v3329_v4 }
 0x1ad   :  { %642 = vst [vmem:[#allocation3 + $0x1] sm:$0x1] %v641_v5  ;;  %725 = vmatmul.f32.vlgmr.msrb.gmra.mxu0 %v641_v5  ;;  %745 = vmatmul.f32.vlgmr.msrb.gmra.mxu1 %v641_v5 }
 0x1ae   :  { %765 = vmatmul.f32.vlgmr.msrb.gmra.mxu2 %v641_v5  ;;  %785 = vmatmul.f32.vlgmr.msrb.gmra.mxu3 %v641_v5  ;;  %v3334_v5 = vld [vmem:[%s4173_s2 + $0x98] sm:$0xff] }
 0x1af   :  { %944 = vmatpush.msra.mxu0 %v3191_v30  ;;  %1009 = vmatpush.msra.mxu3 %v3334_v5 }
 0x1b1   :  { %945 = vmatpush.msra.mxu0 %v3213_v35 }
 0x1b3   :  { %946 = vmatpush.msra.mxu0 %v3237_v44 }
 0x1b5   :  { %947 = vmatpush.msra.mxu0 %v3263_v51 }
 0x1b7   :  { %948 = vmatpush.msra.mxu0 %v3290_v58 }
 0x1b9   :  { %949 = vmatpush.msra.mxu0 %v3317_v0 }
 0x22a   :  { %v746_v24 = vpop.f32.mrf.mxu1  ;;  %v726_v46 = vpop.f32.mrf.mxu0 }
 0x22b   :  { %v793_v32 = vrot.slane %v746_v24, 7 }
 0x22d   :  { %v796_v49 = vsel %vm335_vm1, %v726_v46, %v793_v32  ;;  %v3365_v46 = vld [vmem:[%s4173_s2 + $0x40] sm:$0xff] }
 0x22e   :  { %4228 = vst [vmem:[#allocation20_spill] sm:$0xff] %v3365_v46 }
 0x231   :  { %v766_v36 = vpop.f32.mrf.mxu2  ;;  %v786_v37 = vpop.f32.mrf.mxu3 }
 0x232   :  { %v794_v42 = vrot.slane %v766_v36, 6  ;;  %v795_v43 = vrot.slane %v786_v37, 5  ;;  %v3341_v36 = vld [vmem:[%s4173_s2 + $0x60] sm:$0xff]  ;;  %v3346_v37 = vld [vmem:[%s4173_s2 + $0x68] sm:$0xff] }
 0x233   :  { %950 = vmatpush.msra.mxu0 %v3341_v36  ;;  %970 = vmatpush.msra.mxu1 %v3346_v37 }
 0x234   :  { %v797_v50 = vsel %vm337_vm0, %v794_v42, %v795_v43  ;;  %v3353_v42 = vld [vmem:[%s4173_s2 + $0x70] sm:$0xff]  ;;  %v3358_v43 = vld [vmem:[%s4173_s2 + $0x78] sm:$0xff] }
 0x235   :  { %v798_v54 = vsel %vm339_vm2, %v796_v49, %v797_v50  ;;  %4227 = vst [vmem:[#allocation19_spill] sm:$0xff] %v3358_v43  ;;  %v3370_v49 = vld [vmem:[%s4173_s2 + $0x48] sm:$0xff]  ;;  %v3377_v50 = vld [vmem:[%s4173_s2 + $0x50] sm:$0xff]  ;;  %990 = vmatpush.msra.mxu2 %v3353_v42  ;;  %1010 = vmatpush.msra.mxu3 %v3358_v43 }
 0x236   :  { %v3283_v57 = vadd.f32 %v798_v54, %v644_v53  ;;  %4229 = vst [vmem:[#allocation21_spill] sm:$0xff] %v3370_v49  ;;  %v3382_v53 = vld [vmem:[%s4173_s2 + $0x58] sm:$0xff]  ;;  %v3389_v54 = vld [vmem:[%s4173_s2 + $0x20] sm:$0xff]  ;;  %951 = vmatpush.msra.mxu0 %v3365_v46  ;;  %971 = vmatpush.msra.mxu1 %v3370_v49  ;;  %v3418_v49 = vld [vmem:[%s4173_s2 + $0x8] sm:$0xff] }
 0x237   :  { %4230 = vst [vmem:[#allocation22_spill] sm:$0xff] %v3377_v50  ;;  %991 = vmatpush.msra.mxu2 %v3377_v50  ;;  %1011 = vmatpush.msra.mxu3 %v3382_v53  ;;  %v3432_v50 = vld [vmem:[%s4173_s2 + $0x18] sm:$0xff] }
 0x238   :  { %v2107_v39 = vmul.f32 -1.442695, %v3283_v57  ;;  %v821_v62 = vrot.slane %v3283_v57, 1  ;;  %v845_v61 = vrot.slane %v3283_v57, 3  ;;  %4231 = vst [vmem:[#allocation23_spill] sm:$0xff] %v3382_v53  ;;  %952 = vmatpush.msra.mxu0 %v3389_v54  ;;  %v3427_v53 = vld [vmem:[%s4173_s2 + $0x10] sm:$0xff] }
 0x239   :  { %4232 = vst [vmem:[#allocation24_spill] sm:$0xff] %v3389_v54 }
 0x23a   :  { %2160 = vpow2.f32 %v2107_v39  ;;  %v2108_v24 = vmul.f32 -1.442695, %v821_v62  ;;  %v2109_v32 = vmul.f32 -1.442695, %v845_v61  ;;  %v3394_v39 = vld [vmem:[%s4173_s2 + $0x28] sm:$0xff]  ;;  %v3401_v62 = vld [vmem:[%s4173_s2 + $0x30] sm:$0xff] }
 0x23b   :  { %4233 = vst [vmem:[#allocation25_spill] sm:$0xff] %v3394_v39  ;;  %v3406_v61 = vld [vmem:[%s4173_s2 + $0x38] sm:$0xff]  ;;  %972 = vmatpush.msra.mxu1 %v3394_v39  ;;  %992 = vmatpush.msra.mxu2 %v3401_v62 }
 0x23c   :  { %2162 = vpow2.f32 %v2108_v24  ;;  %1012 = vmatpush.msra.mxu3 %v3406_v61 }
 0x23d   :  { %2164 = vpow2.f32 %v2109_v32  ;;  %v3413_v32 = vld [vmem:[%s4173_s2] sm:$0xff]  ;;  %973 = vmatpush.msra.mxu1 %v3418_v49  ;;  %993 = vmatpush.msra.mxu2 %v3427_v53 }
 0x23e   :  { %953 = vmatpush.msra.mxu0 %v3413_v32  ;;  %1013 = vmatpush.msra.mxu3 %v3432_v50 }
 0x23f   :  { %1187 = vmatpush.msrb.mxu1 %v3054_v6  ;;  %1207 = vmatpush.msrb.mxu2 %v3059_v7 }
 0x240   :  { %v2161_v24 = vpop.eup %2160  ;;  %1167 = vmatpush.msrb.mxu0 %v3049_v60  ;;  %1227 = vmatpush.msrb.mxu3 %v3066_v8 }
 0x241   :  { %v3420_v46 = vadd.f32 1.0, %v2161_v24  ;;  %1188 = vmatpush.msrb.mxu1 %v3078_v10  ;;  %1208 = vmatpush.msrb.mxu2 %v3083_v11 }
 0x242   :  { %v2163_v43 = vpop.eup %2162  ;;  %1168 = vmatpush.msrb.mxu0 %v3073_v9  ;;  %1228 = vmatpush.msrb.mxu3 %v3090_v12  ;;  %v842_v9 = vrot.slane %v3283_v57, 2 }
 0x243   :  { %v2165_v24 = vpop.eup %2164  ;;  %2166 = vrcp.f32 %v3420_v46  ;;  %v3437_v54 = vadd.f32 1.0, %v2163_v43  ;;  %1189 = vmatpush.msrb.mxu1 %v3102_v14  ;;  %1209 = vmatpush.msrb.mxu2 %v3107_v15  ;;  %v816_v15 = vand.u32 2147483648, %v3420_v46  ;;  %vm810_vm15 = vweird.f32 %v3420_v46 }
 0x244   :  { %v3441_v39 = vadd.f32 1.0, %v2165_v24  ;;  %1169 = vmatpush.msrb.mxu0 %v3097_v13  ;;  %1229 = vmatpush.msrb.mxu3 %v3114_v16 }
 0x245   :  { %2168 = vrcp.f32 %v3437_v54  ;;  %1190 = vmatpush.msrb.mxu1 %v3126_v18  ;;  %1210 = vmatpush.msrb.mxu2 %v3131_v19  ;;  %vm832_vm6 = vweird.f32 %v3437_v54 }
 0x246   :  { %2170 = vrcp.f32 %v3441_v39  ;;  %1170 = vmatpush.msrb.mxu0 %v3121_v17  ;;  %1230 = vmatpush.msrb.mxu3 %v3138_v20  ;;  %v838_v20 = vand.u32 2147483648, %v3437_v54  ;;  %vm856_vm10 = vweird.f32 %v3441_v39 }
 0x247   :  { %1191 = vmatpush.msrb.mxu1 %v3150_v22  ;;  %1211 = vmatpush.msrb.mxu2 %v3155_v23  ;;  %2172 = vtanh.f32 %v842_v9  ;;  %v817_v9 = vor.u32 1.1754944e-38, %v816_v15 }
 0x248   :  { %1171 = vmatpush.msrb.mxu0 %v3145_v21  ;;  %1231 = vmatpush.msrb.mxu3 %v3162_v25 }
 0x249   :  { %v2167_v43 = vpop.eup %2166  ;;  %1192 = vmatpush.msrb.mxu1 %v3174_v27  ;;  %1212 = vmatpush.msrb.mxu2 %v3179_v28 }
 0x24a   :  { %v806_v24 = vmul.f32 %v2167_v43, %v3420_v46  ;;  %vm811_vm14 = vweird.f32 %v2167_v43  ;;  %1172 = vmatpush.msrb.mxu0 %v3169_v26  ;;  %1232 = vmatpush.msrb.mxu3 %v3186_v29 }
 0x24b   :  { %v2169_v8 = vpop.eup %2168  ;;  %vm812_vm4 = vmor %vm810_vm15, %vm811_vm14  ;;  %1193 = vmatpush.msrb.mxu1 %v3196_v31  ;;  %1213 = vmatpush.msrb.mxu2 %v3203_v33 }
 0x24c   :  { %v3463_v11 = vpop.eup %2170  ;;  %v807_v12 = vsub.f32 1.0, %v806_v24  ;;  %v828_v13 = vmul.f32 %v2169_v8, %v3437_v54  ;;  %v814_v24 = vand.u32 2147483647, %v3420_v46  ;;  %vm833_vm3 = vweird.f32 %v2169_v8  ;;  %1173 = vmatpush.msrb.mxu0 %v3191_v30  ;;  %1233 = vmatpush.msrb.mxu3 %v3208_v34 }
 0x24d   :  { %v852_v16 = vmul.f32 %v3463_v11, %v3441_v39  ;;  %vm834_vm7 = vmor %vm832_vm6, %vm833_vm3  ;;  %1194 = vmatpush.msrb.mxu1 %v3220_v38  ;;  %1214 = vmatpush.msrb.mxu2 %v3225_v40  ;;  %vm857_vm9 = vweird.f32 %v3463_v11 }
 0x24e   :  { %v829_v57 = vsub.f32 1.0, %v828_v13  ;;  %v808_v18 = vmul.f32 %v2167_v43, %v807_v12  ;;  %v836_v12 = vand.u32 2147483647, %v3437_v54  ;;  %vm815_vm5 = vcmp.eq.f32.partialorder %v814_v24, 8.507059e+37  ;;  %1174 = vmatpush.msrb.mxu0 %v3213_v35  ;;  %1234 = vmatpush.msrb.mxu3 %v3230_v41  ;;  %vm858_vm11 = vmor %vm856_vm10, %vm857_vm9 }
 0x24f   :  { %v853_v13 = vsub.f32 1.0, %v852_v16  ;;  %v2173_v16 = vpop.eup %2172  ;;  %1195 = vmatpush.msrb.mxu1 %v3242_v45  ;;  %1215 = vmatpush.msrb.mxu2 %v3249_v47 }
 0x250   :  { %v809_v21 = vadd.f32 %v2167_v43, %v808_v18  ;;  %v830_v22 = vmul.f32 %v2169_v8, %v829_v57  ;;  %v839_v57 = vor.u32 1.1754944e-38, %v838_v20  ;;  %vm837_vm8 = vcmp.eq.f32.partialorder %v836_v12, 8.507059e+37  ;;  %1175 = vmatpush.msrb.mxu0 %v3237_v44  ;;  %1235 = vmatpush.msrb.mxu3 %v3254_v48 }
 0x251   :  { %1196 = vmatpush.msrb.mxu1 %v3268_v52  ;;  %1216 = vmatpush.msrb.mxu2 %v3276_v55 }
 0x252   :  { %v813_v46 = vsel %vm812_vm4, %v2167_v43, %v809_v21  ;;  %v831_v27 = vadd.f32 %v2169_v8, %v830_v22  ;;  %v854_v22 = vmul.f32 %v3463_v11, %v853_v13  ;;  %1176 = vmatpush.msrb.mxu0 %v3263_v51  ;;  %1236 = vmatpush.msrb.mxu3 %v3281_v56  ;;  %v860_v43 = vand.u32 2147483647, %v3441_v39  ;;  %v4236_v13 = vld [vmem:[#allocation21_spill] sm:$0xff] }
 0x253   :  { %v818_v18 = vsel %vm815_vm5, %v817_v9, %v813_v46  ;;  %1197 = vmatpush.msrb.mxu1 %v3295_v59  ;;  %1217 = vmatpush.msrb.mxu2 %v3302_v63  ;;  %v4234_v9 = vld [vmem:[#allocation19_spill] sm:$0xff] }
 0x254   :  { %v835_v15 = vsel %vm834_vm7, %v2169_v8, %v831_v27  ;;  %v867_v54 = vmul.f32 %v2173_v16, %v818_v18  ;;  %v855_v27 = vadd.f32 %v3463_v11, %v854_v22  ;;  %1177 = vmatpush.msrb.mxu0 %v3290_v58  ;;  %1237 = vmatpush.msrb.mxu3 %v3307_v3  ;;  %vm861_vm12 = vcmp.eq.f32.partialorder %v860_v43, 8.507059e+37  ;;  %v4239_v16 = vld [vmem:[#allocation24_spill] sm:$0xff]  ;;  %v4241_v22 = vld [vmem:[#allocation7_spill] sm:$0xff] }
 0x255   :  { %v840_v21 = vsel %vm837_vm8, %v839_v57, %v835_v15  ;;  %1198 = vmatpush.msrb.mxu1 %v3322_v1  ;;  %1218 = vmatpush.msrb.mxu2 %v3329_v4  ;;  %v4237_v57 = vld [vmem:[#allocation22_spill] sm:$0xff]  ;;  %v4238_v15 = vld [vmem:[#allocation23_spill] sm:$0xff]  ;;  %v4246_v43 = vld [vmem:[#allocation12_spill] sm:$0xff] }
 0x256   :  { %v866_v20 = vmul.f32 %v840_v21, %v3043_v2  ;;  %v862_v2 = vand.u32 2147483648, %v3441_v39  ;;  %1178 = vmatpush.msrb.mxu0 %v3317_v0  ;;  %1238 = vmatpush.msrb.mxu3 %v3334_v5  ;;  %v859_v24 = vsel %vm858_vm11, %v3463_v11, %v855_v27  ;;  %v4235_v39 = vld [vmem:[#allocation20_spill] sm:$0xff]  ;;  %v4240_v21 = vld [vmem:[#allocation25_spill] sm:$0xff]  ;;  %v4244_v27 = vld [vmem:[#allocation10_spill] sm:$0xff] }
 0x257   :  { %1199 = vmatpush.msrb.mxu1 %v3346_v37  ;;  %1219 = vmatpush.msrb.mxu2 %v3353_v42 }
 0x258   :  { %v3502_v8 = vadd.f32 %v867_v54, %v866_v20  ;;  %1179 = vmatpush.msrb.mxu0 %v3341_v36  ;;  %v863_v12 = vor.u32 1.1754944e-38, %v862_v2  ;;  %1239 = vmatpush.msrb.mxu3 %v4234_v9  ;;  %v4242_v20 = vld [vmem:[#allocation8_spill] sm:$0xff]  ;;  %v4243_v54 = vld [vmem:[#allocation9_spill] sm:$0xff]  ;;  %v4245_v2 = vld [vmem:[#allocation11_spill] sm:$0xff] }
 0x259   :  { %1200 = vmatpush.msrb.mxu1 %v4236_v13  ;;  %1220 = vmatpush.msrb.mxu2 %v4237_v57 }
 0x25a   :  { %2174 = vtanh.f32 %v3502_v8  ;;  %1180 = vmatpush.msrb.mxu0 %v4235_v39  ;;  %v864_v18 = vsel %vm861_vm12, %v863_v12, %v859_v24  ;;  %1240 = vmatpush.msrb.mxu3 %v4238_v15  ;;  %v4251_v24 = vld [vmem:[#allocation17_spill] sm:$0xff] }
 0x25b   :  { %1201 = vmatpush.msrb.mxu1 %v4240_v21  ;;  %1221 = vmatpush.msrb.mxu2 %v3401_v62 }
 0x25c   :  { %1181 = vmatpush.msrb.mxu0 %v4239_v16  ;;  %1241 = vmatpush.msrb.mxu3 %v3406_v61 }
 0x25d   :  { %1202 = vmatpush.msrb.mxu1 %v3418_v49  ;;  %1222 = vmatpush.msrb.mxu2 %v3427_v53 }
 0x25e   :  { %1182 = vmatpush.msrb.mxu0 %v3413_v32  ;;  %1242 = vmatpush.msrb.mxu3 %v3432_v50 }
 0x260   :  { %v2175_v46 = vpop.eup %2174 }
 0x261   :  { %v870_v11 = vmul.f32 %v2175_v46, %v864_v18 }
 0x263   :  { %871 = vst [vmem:[#allocation3 + $0x2] sm:$0x1] %v870_v11  ;;  %954 = vmatmul.f32.vlgmr.msra.gmra.mxu0 %v870_v11  ;;  %974 = vmatmul.f32.vlgmr.msra.gmra.mxu1 %v870_v11 }
 0x264   :  { %994 = vmatmul.f32.vlgmr.msra.gmra.mxu2 %v870_v11  ;;  %1014 = vmatmul.f32.vlgmr.msra.gmra.mxu3 %v870_v11 }
 0x265   :  { %1396 = vmatpush.msra.mxu0 %v3049_v60  ;;  %1416 = vmatpush.msra.mxu1 %v3054_v6  ;;  %v4247_v60 = vld [vmem:[#allocation13_spill] sm:$0xff]  ;;  %v4248_v6 = vld [vmem:[#allocation14_spill] sm:$0xff] }
 0x266   :  { %1436 = vmatpush.msra.mxu2 %v3059_v7  ;;  %1456 = vmatpush.msra.mxu3 %v4241_v22  ;;  %v4249_v7 = vld [vmem:[#allocation15_spill] sm:$0xff] }
 0x267   :  { %1397 = vmatpush.msra.mxu0 %v4242_v20  ;;  %1417 = vmatpush.msra.mxu1 %v3078_v10  ;;  %v4250_v10 = vld [vmem:[#allocation16_spill] sm:$0xff] }
 0x268   :  { %1437 = vmatpush.msra.mxu2 %v4243_v54  ;;  %1457 = vmatpush.msra.mxu3 %v4244_v27 }
 0x269   :  { %1398 = vmatpush.msra.mxu0 %v4245_v2  ;;  %1418 = vmatpush.msra.mxu1 %v3102_v14  ;;  %v4252_v14 = vld [vmem:[#allocation18_spill] sm:$0xff] }
 0x26a   :  { %1438 = vmatpush.msra.mxu2 %v4246_v43  ;;  %1458 = vmatpush.msra.mxu3 %v4247_v60 }
 0x26b   :  { %1399 = vmatpush.msra.mxu0 %v3121_v17  ;;  %1419 = vmatpush.msra.mxu1 %v4248_v6 }
 0x26c   :  { %1439 = vmatpush.msra.mxu2 %v3131_v19  ;;  %1459 = vmatpush.msra.mxu3 %v4249_v7 }
 0x26d   :  { %1400 = vmatpush.msra.mxu0 %v4250_v10  ;;  %1420 = vmatpush.msra.mxu1 %v4251_v24 }
 0x26e   :  { %1440 = vmatpush.msra.mxu2 %v3155_v23  ;;  %1460 = vmatpush.msra.mxu3 %v3162_v25 }
 0x26f   :  { %1401 = vmatpush.msra.mxu0 %v3169_v26  ;;  %1421 = vmatpush.msra.mxu1 %v4252_v14 }
 0x270   :  { %1441 = vmatpush.msra.mxu2 %v3179_v28  ;;  %1461 = vmatpush.msra.mxu3 %v3186_v29 }
 0x271   :  { %1402 = vmatpush.msra.mxu0 %v3191_v30  ;;  %1422 = vmatpush.msra.mxu1 %v3196_v31 }
 0x272   :  { %1442 = vmatpush.msra.mxu2 %v3203_v33  ;;  %1462 = vmatpush.msra.mxu3 %v3208_v34  ;;  %v873_v33 = vld [vmem:[#allocation2 + $0x3] ss:$8 sm:$0xf] }
 0x273   :  { %1403 = vmatpush.msra.mxu0 %v3213_v35  ;;  %1423 = vmatpush.msra.mxu1 %v3220_v38 }
 0x274   :  { %1443 = vmatpush.msra.mxu2 %v3225_v40  ;;  %1463 = vmatpush.msra.mxu3 %v3230_v41 }
 0x275   :  { %1404 = vmatpush.msra.mxu0 %v3237_v44  ;;  %1424 = vmatpush.msra.mxu1 %v3242_v45 }
 0x276   :  { %1444 = vmatpush.msra.mxu2 %v3249_v47  ;;  %1464 = vmatpush.msra.mxu3 %v3254_v48 }
 0x277   :  { %1405 = vmatpush.msra.mxu0 %v3263_v51  ;;  %1425 = vmatpush.msra.mxu1 %v3268_v52 }
 0x278   :  { %1445 = vmatpush.msra.mxu2 %v3276_v55  ;;  %1465 = vmatpush.msra.mxu3 %v3281_v56 }
 0x279   :  { %1406 = vmatpush.msra.mxu0 %v3290_v58  ;;  %1426 = vmatpush.msra.mxu1 %v3295_v59 }
 0x27a   :  { %1446 = vmatpush.msra.mxu2 %v3302_v63  ;;  %1466 = vmatpush.msra.mxu3 %v3307_v3 }
 0x27b   :  { %1407 = vmatpush.msra.mxu0 %v3317_v0  ;;  %1427 = vmatpush.msra.mxu1 %v3322_v1 }
 0x27c   :  { %1447 = vmatpush.msra.mxu2 %v3329_v4  ;;  %1467 = vmatpush.msra.mxu3 %v3334_v5 }
 0x27d   :  { %1408 = vmatpush.msra.mxu0 %v3341_v36  ;;  %1428 = vmatpush.msra.mxu1 %v3346_v37 }
 0x27e   :  { %1448 = vmatpush.msra.mxu2 %v3353_v42  ;;  %1468 = vmatpush.msra.mxu3 %v4234_v9 }
 0x27f   :  { %1409 = vmatpush.msra.mxu0 %v4235_v39  ;;  %1429 = vmatpush.msra.mxu1 %v4236_v13 }
 0x280   :  { %1449 = vmatpush.msra.mxu2 %v4237_v57  ;;  %1469 = vmatpush.msra.mxu3 %v4238_v15 }
 0x281   :  { %1410 = vmatpush.msra.mxu0 %v4239_v16  ;;  %1430 = vmatpush.msra.mxu1 %v4240_v21 }
 0x282   :  { %1450 = vmatpush.msra.mxu2 %v3401_v62  ;;  %1470 = vmatpush.msra.mxu3 %v3406_v61 }
 0x283   :  { %1411 = vmatpush.msra.mxu0 %v3413_v32  ;;  %1431 = vmatpush.msra.mxu1 %v3418_v49 }
 0x284   :  { %1451 = vmatpush.msra.mxu2 %v3427_v53  ;;  %1471 = vmatpush.msra.mxu3 %v3432_v50 }
 0x2e0   :  { %v975_v17 = vpop.f32.mrf.mxu1  ;;  %v955_v29 = vpop.f32.mrf.mxu0 }
 0x2e1   :  { %v1022_v19 = vrot.slane %v975_v17, 7 }
 0x2e3   :  { %v1025_v30 = vsel %vm335_vm1, %v955_v29, %v1022_v19 }
 0x2e7   :  { %v995_v23 = vpop.f32.mrf.mxu2  ;;  %v1015_v25 = vpop.f32.mrf.mxu3 }
 0x2e8   :  { %v1023_v26 = vrot.slane %v995_v23, 6  ;;  %v1024_v28 = vrot.slane %v1015_v25, 5 }
 0x2ea   :  { %v1026_v31 = vsel %vm337_vm0, %v1023_v26, %v1024_v28  ;;  %v1102_v28 = vld [vmem:[#allocation2 + $0x4] ss:$8 sm:$0xf] }
 0x2eb   :  { %v1027_v34 = vsel %vm339_vm2, %v1025_v30, %v1026_v31 }
 0x2ec   :  { %v1029_v35 = vadd.f32 %v1027_v34, %v873_v33 }
 0x2ee   :  { %v2110_v38 = vmul.f32 -1.442695, %v1029_v35  ;;  %v1050_v40 = vrot.slane %v1029_v35, 1  ;;  %v1074_v41 = vrot.slane %v1029_v35, 3  ;;  %v1071_v3 = vrot.slane %v1029_v35, 2 }
 0x2f0   :  { %2176 = vpow2.f32 %v2110_v38  ;;  %v2111_v44 = vmul.f32 -1.442695, %v1050_v40  ;;  %v2112_v45 = vmul.f32 -1.442695, %v1074_v41 }
 0x2f2   :  { %2178 = vpow2.f32 %v2111_v44 }
 0x2f3   :  { %2180 = vpow2.f32 %v2112_v45 }
 0x2f6   :  { %v2177_v47 = vpop.eup %2176 }
 0x2f7   :  { %v1033_v48 = vadd.f32 1.0, %v2177_v47 }
 0x2f8   :  { %v2179_v51 = vpop.eup %2178 }
 0x2f9   :  { %v2181_v52 = vpop.eup %2180  ;;  %2182 = vrcp.f32 %v1033_v48  ;;  %v1055_v55 = vadd.f32 1.0, %v2179_v51  ;;  %v1045_v5 = vand.u32 2147483648, %v1033_v48  ;;  %v1043_v49 = vand.u32 2147483647, %v1033_v48 }
 0x2fa   :  { %v1079_v56 = vadd.f32 1.0, %v2181_v52  ;;  %vm1039_vm14 = vweird.f32 %v1033_v48 }
 0x2fb   :  { %2184 = vrcp.f32 %v1055_v55  ;;  %v1067_v50 = vand.u32 2147483648, %v1055_v55  ;;  %v1065_v61 = vand.u32 2147483647, %v1055_v55  ;;  %v1046_v32 = vor.u32 1.1754944e-38, %v1045_v5 }
 0x2fc   :  { %2186 = vrcp.f32 %v1079_v56  ;;  %vm1044_vm4 = vcmp.eq.f32.partialorder %v1043_v49, 8.507059e+37  ;;  %vm1061_vm5 = vweird.f32 %v1055_v55  ;;  %v1091_v54 = vand.u32 2147483648, %v1079_v56 }
 0x2fd   :  { %2188 = vtanh.f32 %v1071_v3  ;;  %v1068_v46 = vor.u32 1.1754944e-38, %v1067_v50  ;;  %vm1066_vm7 = vcmp.eq.f32.partialorder %v1065_v61, 8.507059e+37  ;;  %vm1085_vm9 = vweird.f32 %v1079_v56 }
 0x2fe   :  { %v1089_v27 = vand.u32 2147483647, %v1079_v56  ;;  %v1092_v43 = vor.u32 1.1754944e-38, %v1091_v54 }
 0x2ff   :  { %v2183_v58 = vpop.eup %2182 }
 0x300   :  { %v1035_v59 = vmul.f32 %v2183_v58, %v1033_v48  ;;  %vm1040_vm13 = vweird.f32 %v2183_v58  ;;  %vm1090_vm11 = vcmp.eq.f32.partialorder %v1089_v27, 8.507059e+37 }
 0x301   :  { %v2185_v63 = vpop.eup %2184  ;;  %vm1041_vm3 = vmor %vm1039_vm14, %vm1040_vm13 }
 0x302   :  { %v2187_v0 = vpop.eup %2186  ;;  %v1036_v1 = vsub.f32 1.0, %v1035_v59  ;;  %v1057_v4 = vmul.f32 %v2185_v63, %v1055_v55  ;;  %vm1062_vm15 = vweird.f32 %v2185_v63 }
 0x303   :  { %v1081_v36 = vmul.f32 %v2187_v0, %v1079_v56  ;;  %vm1063_vm6 = vmor %vm1061_vm5, %vm1062_vm15  ;;  %v2189_v57 = vpop.eup %2188  ;;  %vm1086_vm8 = vweird.f32 %v2187_v0 }
 0x304   :  { %v1058_v37 = vsub.f32 1.0, %v1057_v4  ;;  %v1037_v42 = vmul.f32 %v2183_v58, %v1036_v1  ;;  %vm1087_vm10 = vmor %vm1085_vm9, %vm1086_vm8 }
 0x305   :  { %v1082_v12 = vsub.f32 1.0, %v1081_v36 }
 0x306   :  { %v1038_v53 = vadd.f32 %v2183_v58, %v1037_v42  ;;  %v1059_v62 = vmul.f32 %v2185_v63, %v1058_v37 }
 0x307   :  { %v1083_v11 = vmul.f32 %v2187_v0, %v1082_v12 }
 0x308   :  { %v1042_v9 = vsel %vm1041_vm3, %v2183_v58, %v1038_v53  ;;  %v1060_v39 = vadd.f32 %v2185_v63, %v1059_v62 }
 0x309   :  { %v1047_v13 = vsel %vm1044_vm4, %v1046_v32, %v1042_v9  ;;  %v1084_v20 = vadd.f32 %v2187_v0, %v1083_v11 }
 0x30a   :  { %v1064_v18 = vsel %vm1063_vm6, %v2185_v63, %v1060_v39  ;;  %v1096_v21 = vmul.f32 %v2189_v57, %v1047_v13 }
 0x30b   :  { %v1069_v15 = vsel %vm1066_vm7, %v1068_v46, %v1064_v18  ;;  %v1088_v2 = vsel %vm1087_vm10, %v2187_v0, %v1084_v20 }
 0x30c   :  { %v1095_v16 = vmul.f32 %v1069_v15, %v3502_v8  ;;  %v1093_v6 = vsel %vm1090_vm11, %v1092_v43, %v1088_v2 }
 0x30e   :  { %v3605_v22 = vadd.f32 %v1096_v21, %v1095_v16 }
 0x310   :  { %2190 = vtanh.f32 %v3605_v22 }
 0x316   :  { %v2191_v60 = vpop.eup %2190 }
 0x317   :  { %v1099_v7 = vmul.f32 %v2191_v60, %v1093_v6  ;;  %v3623_v60 = vld [vmem:[%s4173_s2 + $0x1e8] sm:$0xff]  ;;  %v3628_v6 = vld [vmem:[%s4173_s2 + $0x1f0] sm:$0xff] }
 0x319   :  { %1100 = vst [vmem:[#allocation3 + $0x3] sm:$0x1] %v1099_v7  ;;  %1183 = vmatmul.f32.vlgmr.msrb.gmra.mxu0 %v1099_v7  ;;  %1203 = vmatmul.f32.vlgmr.msrb.gmra.mxu1 %v1099_v7 }
 0x31a   :  { %1223 = vmatmul.f32.vlgmr.msrb.gmra.mxu2 %v1099_v7  ;;  %1243 = vmatmul.f32.vlgmr.msrb.gmra.mxu3 %v1099_v7  ;;  %v3635_v7 = vld [vmem:[%s4173_s2 + $0x1f8] sm:$0xff] }
 0x31b   :  { %1645 = vmatpush.msrb.mxu1 %v3623_v60  ;;  %1665 = vmatpush.msrb.mxu2 %v3628_v6 }
 0x31c   :  { %1685 = vmatpush.msrb.mxu3 %v3635_v7 }
 0x396   :  { %v1204_v8 = vpop.f32.mrf.mxu1  ;;  %v1184_v23 = vpop.f32.mrf.mxu0 }
 0x397   :  { %v1251_v10 = vrot.slane %v1204_v8, 7  ;;  %v3642_v8 = vld [vmem:[%s4173_s2 + $0x1c0] sm:$0xff] }
 0x399   :  { %v1254_v25 = vsel %vm335_vm1, %v1184_v23, %v1251_v10  ;;  %v3647_v10 = vld [vmem:[%s4173_s2 + $0x1c8] sm:$0xff]  ;;  %v3676_v23 = vld [vmem:[%s4173_s2 + $0x1b0] sm:$0xff] }
 0x39a   :  { %1646 = vmatpush.msrb.mxu1 %v3647_v10 }
 0x39d   :  { %v1224_v24 = vpop.f32.mrf.mxu2  ;;  %v1244_v14 = vpop.f32.mrf.mxu3 }
 0x39e   :  { %v1252_v17 = vrot.slane %v1224_v24, 6  ;;  %v1253_v19 = vrot.slane %v1244_v14, 5  ;;  %v3652_v24 = vld [vmem:[%s4173_s2 + $0x1d0] sm:$0xff]  ;;  %v3659_v14 = vld [vmem:[%s4173_s2 + $0x1d8] sm:$0xff] }
 0x39f   :  { %1666 = vmatpush.msrb.mxu2 %v3652_v24  ;;  %1686 = vmatpush.msrb.mxu3 %v3659_v14 }
 0x3a0   :  { %v1255_v26 = vsel %vm337_vm0, %v1252_v17, %v1253_v19  ;;  %v3666_v17 = vld [vmem:[%s4173_s2 + $0x1a0] sm:$0xff]  ;;  %v3671_v19 = vld [vmem:[%s4173_s2 + $0x1a8] sm:$0xff] }
 0x3a1   :  { %v1256_v29 = vsel %vm339_vm2, %v1254_v25, %v1255_v26  ;;  %1647 = vmatpush.msrb.mxu1 %v3671_v19  ;;  %v3683_v25 = vld [vmem:[%s4173_s2 + $0x1b8] sm:$0xff]  ;;  %1667 = vmatpush.msrb.mxu2 %v3676_v23  ;;  %v3690_v26 = vld [vmem:[%s4173_s2 + $0x180] sm:$0xff] }
 0x3a2   :  { %v1258_v30 = vadd.f32 %v1256_v29, %v1102_v28  ;;  %1687 = vmatpush.msrb.mxu3 %v3683_v25  ;;  %v3695_v28 = vld [vmem:[%s4173_s2 + $0x188] sm:$0xff]  ;;  %v3700_v29 = vld [vmem:[%s4173_s2 + $0x190] sm:$0xff] }
 0x3a3   :  { %1648 = vmatpush.msrb.mxu1 %v3695_v28  ;;  %1668 = vmatpush.msrb.mxu2 %v3700_v29 }
 0x3a4   :  { %v2113_v31 = vmul.f32 -1.442695, %v1258_v30  ;;  %v1279_v33 = vrot.slane %v1258_v30, 1  ;;  %v1303_v34 = vrot.slane %v1258_v30, 3  ;;  %v1300_v56 = vrot.slane %v1258_v30, 2  ;;  %v3707_v30 = vld [vmem:[%s4173_s2 + $0x198] sm:$0xff] }
 0x3a5   :  { %1688 = vmatpush.msrb.mxu3 %v3707_v30 }
 0x3a6   :  { %2192 = vpow2.f32 %v2113_v31  ;;  %v2114_v35 = vmul.f32 -1.442695, %v1279_v33  ;;  %v2115_v38 = vmul.f32 -1.442695, %v1303_v34  ;;  %v3714_v31 = vld [vmem:[%s4173_s2 + $0x160] sm:$0xff]  ;;  %v3719_v33 = vld [vmem:[%s4173_s2 + $0x168] sm:$0xff] }
 0x3a7   :  { %v3724_v34 = vld [vmem:[%s4173_s2 + $0x170] sm:$0xff]  ;;  %1649 = vmatpush.msrb.mxu1 %v3719_v33 }
 0x3a8   :  { %2194 = vpow2.f32 %v2114_v35  ;;  %1669 = vmatpush.msrb.mxu2 %v3724_v34 }
 0x3a9   :  { %2196 = vpow2.f32 %v2115_v38  ;;  %v3731_v38 = vld [vmem:[%s4173_s2 + $0x178] sm:$0xff] }
 0x3aa   :  { %1689 = vmatpush.msrb.mxu3 %v3731_v38 }
 0x3ac   :  { %v2193_v40 = vpop.eup %2192 }
 0x3ad   :  { %v1262_v41 = vadd.f32 1.0, %v2193_v40  ;;  %v3738_v40 = vld [vmem:[%s4173_s2 + $0x140] sm:$0xff] }
 0x3ae   :  { %v2195_v44 = vpop.eup %2194 }
 0x3af   :  { %v2197_v45 = vpop.eup %2196  ;;  %2198 = vrcp.f32 %v1262_v41  ;;  %v1284_v47 = vadd.f32 1.0, %v2195_v44  ;;  %v1274_v3 = vand.u32 2147483648, %v1262_v41  ;;  %v1272_v5 = vand.u32 2147483647, %v1262_v41  ;;  %v3748_v44 = vld [vmem:[%s4173_s2 + $0x150] sm:$0xff] }
 0x3b0   :  { %v1308_v48 = vadd.f32 1.0, %v2197_v45  ;;  %vm1268_vm13 = vweird.f32 %v1262_v41  ;;  %v3755_v45 = vld [vmem:[%s4173_s2 + $0x158] sm:$0xff]  ;;  %1670 = vmatpush.msrb.mxu2 %v3748_v44 }
 0x3b1   :  { %2200 = vrcp.f32 %v1284_v47  ;;  %v1296_v36 = vand.u32 2147483648, %v1284_v47  ;;  %v1294_v49 = vand.u32 2147483647, %v1284_v47  ;;  %v1275_v50 = vor.u32 1.1754944e-38, %v1274_v3  ;;  %1690 = vmatpush.msrb.mxu3 %v3755_v45  ;;  %v3794_v3 = vld [vmem:[%s4173_s2 + $0x110] sm:$0xff] }
 0x3b2   :  { %2202 = vrcp.f32 %v1308_v48  ;;  %vm1273_vm3 = vcmp.eq.f32.partialorder %v1272_v5, 8.507059e+37  ;;  %vm1290_vm4 = vweird.f32 %v1284_v47  ;;  %v1320_v16 = vand.u32 2147483648, %v1308_v48  ;;  %v3806_v5 = vld [vmem:[%s4173_s2 + $0xe0] sm:$0xff] }
 0x3b3   :  { %2204 = vtanh.f32 %v1300_v56  ;;  %v1297_v12 = vor.u32 1.1754944e-38, %v1296_v36  ;;  %vm1295_vm6 = vcmp.eq.f32.partialorder %v1294_v49, 8.507059e+37  ;;  %vm1314_vm8 = vweird.f32 %v1308_v48  ;;  %v3782_v56 = vld [vmem:[%s4173_s2 + $0x100] sm:$0xff]  ;;  %v3811_v36 = vld [vmem:[%s4173_s2 + $0xe8] sm:$0xff]  ;;  %v3823_v49 = vld [vmem:[%s4173_s2 + $0xf8] sm:$0xff] }
 0x3b4   :  { %v1318_v21 = vand.u32 2147483647, %v1308_v48  ;;  %v1321_v54 = vor.u32 1.1754944e-38, %v1320_v16 }
 0x3b5   :  { %v2199_v51 = vpop.eup %2198 }
 0x3b6   :  { %v1264_v52 = vmul.f32 %v2199_v51, %v1262_v41  ;;  %vm1269_vm12 = vweird.f32 %v2199_v51  ;;  %vm1319_vm10 = vcmp.eq.f32.partialorder %v1318_v21, 8.507059e+37  ;;  %v3743_v41 = vld [vmem:[%s4173_s2 + $0x148] sm:$0xff] }
 0x3b7   :  { %v2201_v55 = vpop.eup %2200  ;;  %vm1270_vm15 = vmor %vm1268_vm13, %vm1269_vm12  ;;  %1650 = vmatpush.msrb.mxu1 %v3743_v41 }
 0x3b8   :  { %v2203_v58 = vpop.eup %2202  ;;  %v1265_v59 = vsub.f32 1.0, %v1264_v52  ;;  %v1286_v63 = vmul.f32 %v2201_v55, %v1284_v47  ;;  %vm1291_vm14 = vweird.f32 %v2201_v55  ;;  %v3760_v47 = vld [vmem:[%s4173_s2 + $0x120] sm:$0xff]  ;;  %v3772_v52 = vld [vmem:[%s4173_s2 + $0x130] sm:$0xff] }
 0x3b9   :  { %v1310_v0 = vmul.f32 %v2203_v58, %v1308_v48  ;;  %vm1292_vm5 = vmor %vm1290_vm4, %vm1291_vm14  ;;  %v2205_v39 = vpop.eup %2204  ;;  %vm1315_vm7 = vweird.f32 %v2203_v58  ;;  %v3765_v48 = vld [vmem:[%s4173_s2 + $0x128] sm:$0xff]  ;;  %1671 = vmatpush.msrb.mxu2 %v3772_v52 }
 0x3ba   :  { %v1287_v1 = vsub.f32 1.0, %v1286_v63  ;;  %v1266_v4 = vmul.f32 %v2199_v51, %v1265_v59  ;;  %vm1316_vm9 = vmor %vm1314_vm8, %vm1315_vm7  ;;  %1651 = vmatpush.msrb.mxu1 %v3765_v48  ;;  %v3789_v63 = vld [vmem:[%s4173_s2 + $0x108] sm:$0xff] }
 0x3bb   :  { %v1311_v53 = vsub.f32 1.0, %v1310_v0  ;;  %v3799_v0 = vld [vmem:[%s4173_s2 + $0x118] sm:$0xff]  ;;  %1672 = vmatpush.msrb.mxu2 %v3794_v3 }
 0x3bc   :  { %v1267_v37 = vadd.f32 %v2199_v51, %v1266_v4  ;;  %v1288_v42 = vmul.f32 %v2201_v55, %v1287_v1  ;;  %1652 = vmatpush.msrb.mxu1 %v3789_v63 }
 0x3bd   :  { %v1312_v46 = vmul.f32 %v2203_v58, %v1311_v53 }
 0x3be   :  { %v1271_v62 = vsel %vm1270_vm15, %v2199_v51, %v1267_v37  ;;  %v1289_v61 = vadd.f32 %v2201_v55, %v1288_v42  ;;  %v3818_v42 = vld [vmem:[%s4173_s2 + $0xf0] sm:$0xff]  ;;  %1653 = vmatpush.msrb.mxu1 %v3811_v36 }
 0x3bf   :  { %v1276_v32 = vsel %vm1273_vm3, %v1275_v50, %v1271_v62  ;;  %v1313_v11 = vadd.f32 %v2203_v58, %v1312_v46  ;;  %v3832_v62 = vld [vmem:[%s4173_s2 + $0xc0] sm:$0xff]  ;;  %1673 = vmatpush.msrb.mxu2 %v3818_v42 }
 0x3c0   :  { %v1293_v9 = vsel %vm1292_vm5, %v2201_v55, %v1289_v61  ;;  %v1325_v57 = vmul.f32 %v2205_v39, %v1276_v32  ;;  %v3777_v55 = vld [vmem:[%s4173_s2 + $0x138] sm:$0xff]  ;;  %v3837_v61 = vld [vmem:[%s4173_s2 + $0xc8] sm:$0xff]  ;;  %v3859_v46 = vld [vmem:[%s4173_s2 + $0xa0] sm:$0xff] }
 0x3c1   :  { %v1298_v13 = vsel %vm1295_vm6, %v1297_v12, %v1293_v9  ;;  %v1317_v20 = vsel %vm1316_vm9, %v2203_v58, %v1313_v11  ;;  %1691 = vmatpush.msrb.mxu3 %v3777_v55  ;;  %v1331_v32 = vld [vmem:[#allocation2 + $0x5] ss:$8 sm:$0xf]  ;;  %1654 = vmatpush.msrb.mxu1 %v3837_v61 }
 0x3c2   :  { %v1324_v18 = vmul.f32 %v1298_v13, %v3605_v22  ;;  %v1322_v2 = vsel %vm1319_vm10, %v1321_v54, %v1317_v20  ;;  %v3618_v22 = vld [vmem:[%s4173_s2 + $0x1e0] sm:$0xff]  ;;  %v3845_v9 = vld [vmem:[%s4173_s2 + $0xd0] sm:$0xff]  ;;  %v3850_v39 = vld [vmem:[%s4173_s2 + $0xd8] sm:$0xff] }
 0x3c3   :  { %1625 = vmatpush.msrb.mxu0 %v3618_v22  ;;  %1692 = vmatpush.msrb.mxu3 %v3799_v0  ;;  %v3876_v11 = vld [vmem:[%s4173_s2 + $0xb8] sm:$0xff]  ;;  %v3886_v54 = vld [vmem:[%s4173_s2 + $0x80] sm:$0xff] }
 0x3c4   :  { %v3612_v15 = vadd.f32 %v1325_v57, %v1324_v18  ;;  %v3864_v18 = vld [vmem:[%s4173_s2 + $0xa8] sm:$0xff]  ;;  %v3871_v57 = vld [vmem:[%s4173_s2 + $0xb0] sm:$0xff]  ;;  %1674 = vmatpush.msrb.mxu2 %v3845_v9 }
 0x3c5   :  { %1626 = vmatpush.msrb.mxu0 %v3642_v8  ;;  %1693 = vmatpush.msrb.mxu3 %v3823_v49 }
 0x3c6   :  { %2206 = vtanh.f32 %v3612_v15  ;;  %1655 = vmatpush.msrb.mxu1 %v3864_v18  ;;  %1675 = vmatpush.msrb.mxu2 %v3871_v57 }
 0x3c7   :  { %1627 = vmatpush.msrb.mxu0 %v3666_v17  ;;  %1694 = vmatpush.msrb.mxu3 %v3850_v39 }
 0x3c9   :  { %1628 = vmatpush.msrb.mxu0 %v3690_v26  ;;  %1695 = vmatpush.msrb.mxu3 %v3876_v11 }
 0x3cb   :  { %1629 = vmatpush.msrb.mxu0 %v3714_v31 }
 0x3cc   :  { %v2207_v27 = vpop.eup %2206 }
 0x3cd   :  { %v1328_v43 = vmul.f32 %v2207_v27, %v1322_v2  ;;  %1630 = vmatpush.msrb.mxu0 %v3738_v40  ;;  %v3891_v27 = vld [vmem:[%s4173_s2 + $0x88] sm:$0xff]  ;;  %v3898_v2 = vld [vmem:[%s4173_s2 + $0x90] sm:$0xff] }
 0x3ce   :  { %1656 = vmatpush.msrb.mxu1 %v3891_v27  ;;  %1676 = vmatpush.msrb.mxu2 %v3898_v2 }
 0x3cf   :  { %1329 = vst [vmem:[#allocation3 + $0x4] sm:$0x1] %v1328_v43  ;;  %1412 = vmatmul.f32.vlgmr.msra.gmra.mxu0 %v1328_v43  ;;  %1432 = vmatmul.f32.vlgmr.msra.gmra.mxu1 %v1328_v43 }
 0x3d0   :  { %1452 = vmatmul.f32.vlgmr.msra.gmra.mxu2 %v1328_v43  ;;  %1472 = vmatmul.f32.vlgmr.msra.gmra.mxu3 %v1328_v43  ;;  %v3903_v43 = vld [vmem:[%s4173_s2 + $0x98] sm:$0xff] }
 0x3d1   :  { %1631 = vmatpush.msrb.mxu0 %v3760_v47  ;;  %1696 = vmatpush.msrb.mxu3 %v3903_v43 }
 0x3d3   :  { %1632 = vmatpush.msrb.mxu0 %v3782_v56 }
 0x3d5   :  { %1633 = vmatpush.msrb.mxu0 %v3806_v5 }
 0x3d7   :  { %1634 = vmatpush.msrb.mxu0 %v3832_v62 }
 0x3d9   :  { %1635 = vmatpush.msrb.mxu0 %v3859_v46 }
 0x3db   :  { %1636 = vmatpush.msrb.mxu0 %v3886_v54 }
 0x44c   :  { %v1433_v35 = vpop.f32.mrf.mxu1  ;;  %v1413_v37 = vpop.f32.mrf.mxu0 }
 0x44d   :  { %v1480_v51 = vrot.slane %v1433_v35, 7 }
 0x44f   :  { %v1483_v50 = vsel %vm335_vm1, %v1413_v37, %v1480_v51  ;;  %v3934_v37 = vld [vmem:[%s4173_s2 + $0x40] sm:$0xff] }
 0x450   :  { %4254 = vst [vmem:[#allocation20_spill] sm:$0xff] %v3934_v37 }
 0x453   :  { %v1453_v58 = vpop.f32.mrf.mxu2  ;;  %v1473_v59 = vpop.f32.mrf.mxu3 }
 0x454   :  { %v1481_v1 = vrot.slane %v1453_v58, 6  ;;  %v1482_v4 = vrot.slane %v1473_v59, 5  ;;  %v3910_v58 = vld [vmem:[%s4173_s2 + $0x60] sm:$0xff]  ;;  %v3915_v59 = vld [vmem:[%s4173_s2 + $0x68] sm:$0xff] }
 0x455   :  { %1637 = vmatpush.msrb.mxu0 %v3910_v58  ;;  %1657 = vmatpush.msrb.mxu1 %v3915_v59 }
 0x456   :  { %v1484_v53 = vsel %vm337_vm0, %v1481_v1, %v1482_v4  ;;  %v3922_v1 = vld [vmem:[%s4173_s2 + $0x70] sm:$0xff]  ;;  %v3927_v4 = vld [vmem:[%s4173_s2 + $0x78] sm:$0xff] }
 0x457   :  { %v1485_v12 = vsel %vm339_vm2, %v1483_v50, %v1484_v53  ;;  %4253 = vst [vmem:[#allocation19_spill] sm:$0xff] %v3927_v4  ;;  %v3939_v50 = vld [vmem:[%s4173_s2 + $0x48] sm:$0xff]  ;;  %v3946_v53 = vld [vmem:[%s4173_s2 + $0x50] sm:$0xff]  ;;  %1677 = vmatpush.msrb.mxu2 %v3922_v1  ;;  %1697 = vmatpush.msrb.mxu3 %v3927_v4 }
 0x458   :  { %v3852_v13 = vadd.f32 %v1485_v12, %v1331_v32  ;;  %4255 = vst [vmem:[#allocation21_spill] sm:$0xff] %v3939_v50  ;;  %v3951_v32 = vld [vmem:[%s4173_s2 + $0x58] sm:$0xff]  ;;  %v3958_v12 = vld [vmem:[%s4173_s2 + $0x20] sm:$0xff]  ;;  %1638 = vmatpush.msrb.mxu0 %v3934_v37  ;;  %1658 = vmatpush.msrb.mxu1 %v3939_v50  ;;  %v3987_v50 = vld [vmem:[%s4173_s2 + $0x8] sm:$0xff] }
 0x459   :  { %4256 = vst [vmem:[#allocation22_spill] sm:$0xff] %v3946_v53  ;;  %1678 = vmatpush.msrb.mxu2 %v3946_v53  ;;  %1698 = vmatpush.msrb.mxu3 %v3951_v32  ;;  %v4001_v53 = vld [vmem:[%s4173_s2 + $0x18] sm:$0xff] }
 0x45a   :  { %v2116_v16 = vmul.f32 -1.442695, %v3852_v13  ;;  %v1508_v21 = vrot.slane %v3852_v13, 1  ;;  %v1532_v20 = vrot.slane %v3852_v13, 3  ;;  %4257 = vst [vmem:[#allocation23_spill] sm:$0xff] %v3951_v32  ;;  %1639 = vmatpush.msrb.mxu0 %v3958_v12  ;;  %v3996_v32 = vld [vmem:[%s4173_s2 + $0x10] sm:$0xff] }
 0x45b   :  { %4258 = vst [vmem:[#allocation24_spill] sm:$0xff] %v3958_v12 }
 0x45c   :  { %2208 = vpow2.f32 %v2116_v16  ;;  %v2117_v35 = vmul.f32 -1.442695, %v1508_v21  ;;  %v2118_v51 = vmul.f32 -1.442695, %v1532_v20  ;;  %v3963_v16 = vld [vmem:[%s4173_s2 + $0x28] sm:$0xff]  ;;  %v3970_v21 = vld [vmem:[%s4173_s2 + $0x30] sm:$0xff] }
 0x45d   :  { %4259 = vst [vmem:[#allocation25_spill] sm:$0xff] %v3963_v16  ;;  %v3975_v20 = vld [vmem:[%s4173_s2 + $0x38] sm:$0xff]  ;;  %1659 = vmatpush.msrb.mxu1 %v3963_v16  ;;  %1679 = vmatpush.msrb.mxu2 %v3970_v21 }
 0x45e   :  { %2210 = vpow2.f32 %v2117_v35  ;;  %1699 = vmatpush.msrb.mxu3 %v3975_v20 }
 0x45f   :  { %2212 = vpow2.f32 %v2118_v51  ;;  %v3982_v51 = vld [vmem:[%s4173_s2] sm:$0xff]  ;;  %1660 = vmatpush.msrb.mxu1 %v3987_v50  ;;  %1680 = vmatpush.msrb.mxu2 %v3996_v32 }
 0x460   :  { %1640 = vmatpush.msrb.mxu0 %v3982_v51  ;;  %1700 = vmatpush.msrb.mxu3 %v4001_v53 }
 0x461   :  { %1874 = vmatpush.msra.mxu1 %v3623_v60  ;;  %1894 = vmatpush.msra.mxu2 %v3628_v6  ;;  %v1529_v6 = vrot.slane %v3852_v13, 2 }
 0x462   :  { %v2209_v35 = vpop.eup %2208  ;;  %1854 = vmatpush.msra.mxu0 %v3618_v22  ;;  %1914 = vmatpush.msra.mxu3 %v3635_v7  ;;  %v4265_v13 = vld [vmem:[#allocation24_spill] sm:$0xff] }
 0x463   :  { %v3989_v37 = vadd.f32 1.0, %v2209_v35  ;;  %1875 = vmatpush.msra.mxu1 %v3647_v10  ;;  %1895 = vmatpush.msra.mxu2 %v3652_v24 }
 0x464   :  { %v2211_v4 = vpop.eup %2210  ;;  %1855 = vmatpush.msra.mxu0 %v3642_v8  ;;  %1915 = vmatpush.msra.mxu3 %v3659_v14 }
 0x465   :  { %v2213_v35 = vpop.eup %2212  ;;  %2214 = vrcp.f32 %v3989_v37  ;;  %v4006_v12 = vadd.f32 1.0, %v2211_v4  ;;  %1876 = vmatpush.msra.mxu1 %v3671_v19  ;;  %1896 = vmatpush.msra.mxu2 %v3676_v23  ;;  %v1503_v24 = vand.u32 2147483648, %v3989_v37  ;;  %v1501_v23 = vand.u32 2147483647, %v3989_v37 }
 0x466   :  { %v4010_v16 = vadd.f32 1.0, %v2213_v35  ;;  %1856 = vmatpush.msra.mxu0 %v3666_v17  ;;  %1916 = vmatpush.msra.mxu3 %v3683_v25  ;;  %vm1497_vm12 = vweird.f32 %v3989_v37 }
 0x467   :  { %2216 = vrcp.f32 %v4006_v12  ;;  %1877 = vmatpush.msra.mxu1 %v3695_v28  ;;  %1897 = vmatpush.msra.mxu2 %v3700_v29  ;;  %v1525_v25 = vand.u32 2147483648, %v4006_v12  ;;  %v1523_v29 = vand.u32 2147483647, %v4006_v12  ;;  %vm1502_vm15 = vcmp.eq.f32.partialorder %v1501_v23, 8.507059e+37 }
 0x468   :  { %2218 = vrcp.f32 %v4010_v16  ;;  %1857 = vmatpush.msra.mxu0 %v3690_v26  ;;  %1917 = vmatpush.msra.mxu3 %v3707_v30  ;;  %v1504_v30 = vor.u32 1.1754944e-38, %v1503_v24  ;;  %vm1519_vm3 = vweird.f32 %v4006_v12  ;;  %vm1543_vm7 = vweird.f32 %v4010_v16 }
 0x469   :  { %1878 = vmatpush.msra.mxu1 %v3719_v33  ;;  %1898 = vmatpush.msra.mxu2 %v3724_v34  ;;  %2220 = vtanh.f32 %v1529_v6  ;;  %vm1524_vm5 = vcmp.eq.f32.partialorder %v1523_v29, 8.507059e+37 }
 0x46a   :  { %1858 = vmatpush.msra.mxu0 %v3714_v31  ;;  %1918 = vmatpush.msra.mxu3 %v3731_v38 }
 0x46b   :  { %v2215_v4 = vpop.eup %2214  ;;  %1879 = vmatpush.msra.mxu1 %v3743_v41  ;;  %1899 = vmatpush.msra.mxu2 %v3748_v44 }
 0x46c   :  { %v1493_v22 = vmul.f32 %v2215_v4, %v3989_v37  ;;  %vm1498_vm11 = vweird.f32 %v2215_v4  ;;  %1859 = vmatpush.msra.mxu0 %v3738_v40  ;;  %1919 = vmatpush.msra.mxu3 %v3755_v45  ;;  %v1526_v40 = vor.u32 1.1754944e-38, %v1525_v25 }
 0x46d   :  { %v2217_v60 = vpop.eup %2216  ;;  %vm1499_vm14 = vmor %vm1497_vm12, %vm1498_vm11  ;;  %1880 = vmatpush.msra.mxu1 %v3765_v48  ;;  %1900 = vmatpush.msra.mxu2 %v3772_v52 }
 0x46e   :  { %v4032_v7 = vpop.eup %2218  ;;  %v1494_v8 = vsub.f32 1.0, %v1493_v22  ;;  %v1515_v10 = vmul.f32 %v2217_v60, %v4006_v12  ;;  %vm1520_vm13 = vweird.f32 %v2217_v60  ;;  %1860 = vmatpush.msra.mxu0 %v3760_v47  ;;  %1920 = vmatpush.msra.mxu3 %v3777_v55 }
 0x46f   :  { %v1539_v14 = vmul.f32 %v4032_v7, %v4010_v16  ;;  %vm1521_vm4 = vmor %vm1519_vm3, %vm1520_vm13  ;;  %1881 = vmatpush.msra.mxu1 %v3789_v63  ;;  %1901 = vmatpush.msra.mxu2 %v3794_v3  ;;  %v2221_v44 = vpop.eup %2220  ;;  %vm1544_vm6 = vweird.f32 %v4032_v7  ;;  %v1547_v63 = vand.u32 2147483647, %v4010_v16 }
 0x470   :  { %v1516_v17 = vsub.f32 1.0, %v1515_v10  ;;  %v1495_v19 = vmul.f32 %v2215_v4, %v1494_v8  ;;  %1861 = vmatpush.msra.mxu0 %v3782_v56  ;;  %1921 = vmatpush.msra.mxu3 %v3799_v0  ;;  %vm1545_vm8 = vmor %vm1543_vm7, %vm1544_vm6 }
 0x471   :  { %v1540_v31 = vsub.f32 1.0, %v1539_v14  ;;  %1882 = vmatpush.msra.mxu1 %v3811_v36  ;;  %1902 = vmatpush.msra.mxu2 %v3818_v42  ;;  %vm1548_vm9 = vcmp.eq.f32.partialorder %v1547_v63, 8.507059e+37  ;;  %v4261_v36 = vld [vmem:[#allocation20_spill] sm:$0xff]  ;;  %v4262_v42 = vld [vmem:[#allocation21_spill] sm:$0xff] }
 0x472   :  { %v1496_v26 = vadd.f32 %v2215_v4, %v1495_v19  ;;  %v1517_v28 = vmul.f32 %v2217_v60, %v1516_v17  ;;  %1862 = vmatpush.msra.mxu0 %v3806_v5  ;;  %1922 = vmatpush.msra.mxu3 %v3823_v49  ;;  %v4260_v5 = vld [vmem:[#allocation19_spill] sm:$0xff] }
 0x473   :  { %v1541_v47 = vmul.f32 %v4032_v7, %v1540_v31  ;;  %1883 = vmatpush.msra.mxu1 %v3837_v61  ;;  %1903 = vmatpush.msra.mxu2 %v3845_v9  ;;  %v4263_v61 = vld [vmem:[#allocation22_spill] sm:$0xff]  ;;  %v4264_v9 = vld [vmem:[#allocation23_spill] sm:$0xff] }
 0x474   :  { %v1500_v33 = vsel %vm1499_vm14, %v2215_v4, %v1496_v26  ;;  %v1518_v34 = vadd.f32 %v2217_v60, %v1517_v28  ;;  %1863 = vmatpush.msra.mxu0 %v3832_v62  ;;  %1923 = vmatpush.msra.mxu3 %v3850_v39 }
 0x475   :  { %v1505_v38 = vsel %vm1502_vm15, %v1504_v30, %v1500_v33  ;;  %v1542_v56 = vadd.f32 %v4032_v7, %v1541_v47  ;;  %1884 = vmatpush.msra.mxu1 %v3864_v18  ;;  %1904 = vmatpush.msra.mxu2 %v3871_v57 }
 0x476   :  { %v1522_v41 = vsel %vm1521_vm4, %v2217_v60, %v1518_v34  ;;  %v1554_v52 = vmul.f32 %v2221_v44, %v1505_v38  ;;  %1864 = vmatpush.msra.mxu0 %v3859_v46  ;;  %1924 = vmatpush.msra.mxu3 %v3876_v11  ;;  %v4266_v46 = vld [vmem:[#allocation25_spill] sm:$0xff] }
 0x477   :  { %v1527_v45 = vsel %vm1524_vm5, %v1526_v40, %v1522_v41  ;;  %1885 = vmatpush.msra.mxu1 %v3891_v27  ;;  %1905 = vmatpush.msra.mxu2 %v3898_v2  ;;  %v1546_v3 = vsel %vm1545_vm8, %v4032_v7, %v1542_v56 }
 0x478   :  { %v1553_v48 = vmul.f32 %v1527_v45, %v3612_v15  ;;  %v1549_v15 = vand.u32 2147483648, %v4010_v16  ;;  %1865 = vmatpush.msra.mxu0 %v3886_v54  ;;  %1925 = vmatpush.msra.mxu3 %v3903_v43 }
 0x479   :  { %1886 = vmatpush.msra.mxu1 %v3915_v59  ;;  %1906 = vmatpush.msra.mxu2 %v3922_v1  ;;  %v1560_v1 = vld [vmem:[#allocation2 + $0x6] ss:$8 sm:$0xf] }
 0x47a   :  { %v4071_v55 = vadd.f32 %v1554_v52, %v1553_v48  ;;  %1866 = vmatpush.msra.mxu0 %v3910_v58  ;;  %v1550_v0 = vor.u32 1.1754944e-38, %v1549_v15  ;;  %1926 = vmatpush.msra.mxu3 %v4260_v5 }
 0x47b   :  { %1887 = vmatpush.msra.mxu1 %v4262_v42  ;;  %1907 = vmatpush.msra.mxu2 %v4263_v61 }
 0x47c   :  { %2222 = vtanh.f32 %v4071_v55  ;;  %1867 = vmatpush.msra.mxu0 %v4261_v36  ;;  %v1551_v62 = vsel %vm1548_vm9, %v1550_v0, %v1546_v3  ;;  %1927 = vmatpush.msra.mxu3 %v4264_v9 }
 0x47d   :  { %1888 = vmatpush.msra.mxu1 %v4266_v46  ;;  %1908 = vmatpush.msra.mxu2 %v3970_v21 }
 0x47e   :  { %1868 = vmatpush.msra.mxu0 %v4265_v13  ;;  %1928 = vmatpush.msra.mxu3 %v3975_v20  ;;  %v2032_v13 = vld [vmem:[%s4175_s4 + $0x70] sm:$0xff] }
 0x47f   :  { %1889 = vmatpush.msra.mxu1 %v3987_v50  ;;  %1909 = vmatpush.msra.mxu2 %v3996_v32 }
 0x480   :  { %1869 = vmatpush.msra.mxu0 %v3982_v51  ;;  %1929 = vmatpush.msra.mxu3 %v4001_v53 }
 0x482   :  { %v2223_v49 = vpop.eup %2222 }
 0x483   :  { %v1557_v39 = vmul.f32 %v2223_v49, %v1551_v62 }
 0x485   :  { %1558 = vst [vmem:[#allocation3 + $0x5] sm:$0x1] %v1557_v39  ;;  %1641 = vmatmul.f32.vlgmr.msrb.gmra.mxu0 %v1557_v39  ;;  %1661 = vmatmul.f32.vlgmr.msrb.gmra.mxu1 %v1557_v39 }
 0x486   :  { %1681 = vmatmul.f32.vlgmr.msrb.gmra.mxu2 %v1557_v39  ;;  %1701 = vmatmul.f32.vlgmr.msrb.gmra.mxu3 %v1557_v39  ;;  %v2033_v39 = vld [vmem:[%s4175_s4 + $0x78] sm:$0xff] }
 0x487   :  { %2038 = vmatpush.msrb.mxu0 %v2033_v39 }
 0x489   :  { %2039 = vmatpush.msrb.mxu0 %v2032_v13 }
 0x502   :  { %v1662_v18 = vpop.f32.mrf.mxu1  ;;  %v1642_v43 = vpop.f32.mrf.mxu0 }
 0x503   :  { %v1709_v57 = vrot.slane %v1662_v18, 7 }
 0x505   :  { %v1712_v58 = vsel %vm335_vm1, %v1642_v43, %v1709_v57  ;;  %v2030_v43 = vld [vmem:[%s4175_s4 + $0x60] sm:$0xff] }
 0x509   :  { %v1682_v11 = vpop.f32.mrf.mxu2  ;;  %v1702_v54 = vpop.f32.mrf.mxu3 }
 0x50a   :  { %v1710_v27 = vrot.slane %v1682_v11, 6  ;;  %v1711_v2 = vrot.slane %v1702_v54, 5  ;;  %v2031_v11 = vld [vmem:[%s4175_s4 + $0x68] sm:$0xff] }
 0x50b   :  { %2040 = vmatpush.msrb.mxu0 %v2031_v11 }
 0x50c   :  { %v1713_v59 = vsel %vm337_vm0, %v1710_v27, %v1711_v2 }
 0x50d   :  { %v1714_v37 = vsel %vm339_vm2, %v1712_v58, %v1713_v59  ;;  %2041 = vmatpush.msrb.mxu0 %v2030_v43 }
 0x50e   :  { %v1716_v12 = vadd.f32 %v1714_v37, %v1560_v1  ;;  %v1789_v1 = vld [vmem:[#allocation2 + $0x7] ss:$8 sm:$0xf] }
 0x510   :  { %v2119_v50 = vmul.f32 -1.442695, %v1716_v12  ;;  %v1737_v16 = vrot.slane %v1716_v12, 1  ;;  %v1761_v32 = vrot.slane %v1716_v12, 3  ;;  %v1758_v10 = vrot.slane %v1716_v12, 2  ;;  %v2029_v12 = vld [vmem:[%s4175_s4 + $0x58] sm:$0xff] }
 0x511   :  { %2042 = vmatpush.msrb.mxu0 %v2029_v12  ;;  %v2127_v12 = vld [vmem:[%s4176_s5] ss:$0 sm:$0xff]  ;;  %s2287_s5 = smov [#allocation4]  }
 0x512   :  { %2224 = vpow2.f32 %v2119_v50  ;;  %v2120_v53 = vmul.f32 -1.442695, %v1737_v16  ;;  %v2121_v21 = vmul.f32 -1.442695, %v1761_v32  ;;  %v2028_v16 = vld [vmem:[%s4175_s4 + $0x50] sm:$0xff]  ;;  %s2090_s24 = sshll.u32 %s2287_s5, 4  ;;  %s2091_s24 = int_to_ptr.vmem [resolvable:$true] %s2090_s24 }
 0x513   :  { %2043 = vmatpush.msrb.mxu0 %v2028_v16 }
 0x514   :  { %2226 = vpow2.f32 %v2120_v53 }
 0x515   :  { %2228 = vpow2.f32 %v2121_v21 }
 0x518   :  { %v2225_v20 = vpop.eup %2224 }
 0x519   :  { %v1720_v51 = vadd.f32 1.0, %v2225_v20  ;;  %v2027_v20 = vld [vmem:[%s4175_s4 + $0x48] sm:$0xff] }
 0x51a   :  { %v2227_v35 = vpop.eup %2226  ;;  %2044 = vmatpush.msrb.mxu0 %v2027_v20 }
 0x51b   :  { %v2229_v4 = vpop.eup %2228  ;;  %2230 = vrcp.f32 %v1720_v51  ;;  %v1742_v22 = vadd.f32 1.0, %v2227_v35  ;;  %v1732_v19 = vand.u32 2147483648, %v1720_v51  ;;  %v1730_v28 = vand.u32 2147483647, %v1720_v51 }
 0x51c   :  { %v1766_v60 = vadd.f32 1.0, %v2229_v4  ;;  %vm1726_vm11 = vweird.f32 %v1720_v51  ;;  %v2026_v4 = vld [vmem:[%s4175_s4 + $0x40] sm:$0xff] }
 0x51d   :  { %2232 = vrcp.f32 %v1742_v22  ;;  %v1754_v29 = vand.u32 2147483648, %v1742_v22  ;;  %v1752_v33 = vand.u32 2147483647, %v1742_v22  ;;  %v1733_v34 = vor.u32 1.1754944e-38, %v1732_v19  ;;  %2045 = vmatpush.msrb.mxu0 %v2026_v4 }
 0x51e   :  { %2234 = vrcp.f32 %v1766_v60  ;;  %vm1731_vm14 = vcmp.eq.f32.partialorder %v1730_v28, 8.507059e+37  ;;  %vm1748_vm15 = vweird.f32 %v1742_v22  ;;  %v1778_v5 = vand.u32 2147483648, %v1766_v60 }
 0x51f   :  { %2236 = vtanh.f32 %v1758_v10  ;;  %v1755_v45 = vor.u32 1.1754944e-38, %v1754_v29  ;;  %vm1753_vm4 = vcmp.eq.f32.partialorder %v1752_v33, 8.507059e+37  ;;  %vm1772_vm6 = vweird.f32 %v1766_v60  ;;  %v2018_v29 = vld [vmem:[%s4175_s4] sm:$0xff] }
 0x520   :  { %v1776_v36 = vand.u32 2147483647, %v1766_v60  ;;  %v1779_v49 = vor.u32 1.1754944e-38, %v1778_v5 }
 0x521   :  { %v2231_v6 = vpop.eup %2230 }
 0x522   :  { %v1722_v7 = vmul.f32 %v2231_v6, %v1720_v51  ;;  %vm1727_vm10 = vweird.f32 %v2231_v6  ;;  %vm1777_vm8 = vcmp.eq.f32.partialorder %v1776_v36, 8.507059e+37 }
 0x523   :  { %v2233_v8 = vpop.eup %2232  ;;  %vm1728_vm13 = vmor %vm1726_vm11, %vm1727_vm10 }
 0x524   :  { %v2235_v24 = vpop.eup %2234  ;;  %v1723_v14 = vsub.f32 1.0, %v1722_v7  ;;  %v1744_v17 = vmul.f32 %v2233_v8, %v1742_v22  ;;  %vm1749_vm12 = vweird.f32 %v2233_v8  ;;  %v2025_v22 = vld [vmem:[%s4175_s4 + $0x38] sm:$0xff] }
 0x525   :  { %v1768_v23 = vmul.f32 %v2235_v24, %v1766_v60  ;;  %vm1750_vm3 = vmor %vm1748_vm15, %vm1749_vm12  ;;  %v2237_v48 = vpop.eup %2236  ;;  %vm1773_vm5 = vweird.f32 %v2235_v24  ;;  %2046 = vmatpush.msrb.mxu0 %v2025_v22  ;;  %v2024_v60 = vld [vmem:[%s4175_s4 + $0x30] sm:$0xff] }
 0x526   :  { %v1745_v25 = vsub.f32 1.0, %v1744_v17  ;;  %v1724_v26 = vmul.f32 %v2231_v6, %v1723_v14  ;;  %vm1774_vm7 = vmor %vm1772_vm6, %vm1773_vm5  ;;  %v2022_v14 = vld [vmem:[%s4175_s4 + $0x20] sm:$0xff] }
 0x527   :  { %v1769_v38 = vsub.f32 1.0, %v1768_v23  ;;  %2047 = vmatpush.msrb.mxu0 %v2024_v60  ;;  %v2021_v23 = vld [vmem:[%s4175_s4 + $0x18] sm:$0xff] }
 0x528   :  { %v1725_v30 = vadd.f32 %v2231_v6, %v1724_v26  ;;  %v1746_v31 = vmul.f32 %v2233_v8, %v1745_v25  ;;  %v2020_v25 = vld [vmem:[%s4175_s4 + $0x10] sm:$0xff]  ;;  %v2019_v26 = vld [vmem:[%s4175_s4 + $0x8] sm:$0xff] }
 0x529   :  { %v1770_v56 = vmul.f32 %v2235_v24, %v1769_v38 }
 0x52a   :  { %v1729_v40 = vsel %vm1728_vm13, %v2231_v6, %v1725_v30  ;;  %v1747_v41 = vadd.f32 %v2233_v8, %v1746_v31 }
 0x52b   :  { %v1734_v44 = vsel %vm1731_vm14, %v1733_v34, %v1729_v40  ;;  %v1771_v0 = vadd.f32 %v2235_v24, %v1770_v56 }
 0x52c   :  { %v1751_v47 = vsel %vm1750_vm3, %v2233_v8, %v1747_v41  ;;  %v1783_v63 = vmul.f32 %v2237_v48, %v1734_v44  ;;  %v2023_v8 = vld [vmem:[%s4175_s4 + $0x28] sm:$0xff] }
 0x52d   :  { %v1756_v52 = vsel %vm1753_vm4, %v1755_v45, %v1751_v47  ;;  %v1775_v42 = vsel %vm1774_vm7, %v2235_v24, %v1771_v0  ;;  %2048 = vmatpush.msrb.mxu0 %v2023_v8 }
 0x52e   :  { %v1782_v15 = vmul.f32 %v1756_v52, %v4071_v55  ;;  %v1780_v61 = vsel %vm1777_vm8, %v1779_v49, %v1775_v42 }
 0x52f   :  { %2049 = vmatpush.msrb.mxu0 %v2022_v14 }
 0x530   :  { %v4110_v3 = vadd.f32 %v1783_v63, %v1782_v15 }
 0x531   :  { %2050 = vmatpush.msrb.mxu0 %v2021_v23 }
 0x532   :  { %2238 = vtanh.f32 %v4110_v3 }
 0x533   :  { %2051 = vmatpush.msrb.mxu0 %v2020_v25 }
 0x535   :  { %2052 = vmatpush.msrb.mxu0 %v2019_v26 }
 0x537   :  { %2053 = vmatpush.msrb.mxu0 %v2018_v29 }
 0x538   :  { %v2239_v62 = vpop.eup %2238 }
 0x539   :  { %v1786_v9 = vmul.f32 %v2239_v62, %v1780_v61 }
 0x53b   :  { %1787 = vst [vmem:[#allocation3 + $0x6] sm:$0x1] %v1786_v9  ;;  %1870 = vmatmul.f32.vlgmr.msra.gmra.mxu0 %v1786_v9  ;;  %1890 = vmatmul.f32.vlgmr.msra.gmra.mxu1 %v1786_v9 }
 0x53c   :  { %1910 = vmatmul.f32.vlgmr.msra.gmra.mxu2 %v1786_v9  ;;  %1930 = vmatmul.f32.vlgmr.msra.gmra.mxu3 %v1786_v9 }
 0x5b8   :  { %v1891_v55 = vpop.f32.mrf.mxu1  ;;  %v1871_v2 = vpop.f32.mrf.mxu0 }
 0x5b9   :  { %v1938_v46 = vrot.slane %v1891_v55, 7 }
 0x5bb   :  { %v1941_v58 = vsel %vm335_vm1, %v1871_v2, %v1938_v46 }
 0x5bf   :  { %v1911_v18 = vpop.f32.mrf.mxu2  ;;  %v1931_v57 = vpop.f32.mrf.mxu3 }
 0x5c0   :  { %v1939_v54 = vrot.slane %v1911_v18, 6  ;;  %v1940_v27 = vrot.slane %v1931_v57, 5 }
 0x5c2   :  { %v1942_v59 = vsel %vm337_vm0, %v1939_v54, %v1940_v27 }
 0x5c3   :  { %v1943_v37 = vsel %vm339_vm2, %v1941_v58, %v1942_v59 }
 0x5c4   :  { %v1945_v50 = vadd.f32 %v1943_v37, %v1789_v1  ;;  %v2058_v37 = vlaneseq }
 0x5c6   :  { %v2122_v32 = vmul.f32 -1.442695, %v1945_v50  ;;  %v1966_v53 = vrot.slane %v1945_v50, 1  ;;  %v1990_v21 = vrot.slane %v1945_v50, 3  ;;  %v1987_v34 = vrot.slane %v1945_v50, 2 }
 0x5c8   :  { %2240 = vpow2.f32 %v2122_v32  ;;  %v2123_v51 = vmul.f32 -1.442695, %v1966_v53  ;;  %v2124_v35 = vmul.f32 -1.442695, %v1990_v21 }
 0x5ca   :  { %2242 = vpow2.f32 %v2123_v51 }
 0x5cb   :  { %2244 = vpow2.f32 %v2124_v35 }
 0x5ce   :  { %v2241_v6 = vpop.eup %2240 }
 0x5cf   :  { %v1949_v7 = vadd.f32 1.0, %v2241_v6 }
 0x5d0   :  { %v2243_v10 = vpop.eup %2242 }
 0x5d1   :  { %v2245_v24 = vpop.eup %2244  ;;  %2246 = vrcp.f32 %v1949_v7  ;;  %v1971_v17 = vadd.f32 1.0, %v2243_v10  ;;  %v1961_v44 = vand.u32 2147483648, %v1949_v7  ;;  %v1959_v47 = vand.u32 2147483647, %v1949_v7 }
 0x5d2   :  { %v1995_v19 = vadd.f32 1.0, %v2245_v24  ;;  %vm1955_vm1 = vweird.f32 %v1949_v7 }
 0x5d3   :  { %2248 = vrcp.f32 %v1971_v17  ;;  %v1983_v56 = vand.u32 2147483648, %v1971_v17  ;;  %v1981_v63 = vand.u32 2147483647, %v1971_v17  ;;  %v1962_v5 = vor.u32 1.1754944e-38, %v1961_v44 }
 0x5d4   :  { %2250 = vrcp.f32 %v1995_v19  ;;  %vm1960_vm10 = vcmp.eq.f32.partialorder %v1959_v47, 8.507059e+37  ;;  %vm1977_vm11 = vweird.f32 %v1971_v17  ;;  %v2007_v11 = vand.u32 2147483648, %v1995_v19 }
 0x5d5   :  { %2252 = vtanh.f32 %v1987_v34  ;;  %v1984_v62 = vor.u32 1.1754944e-38, %v1983_v56  ;;  %vm1982_vm13 = vcmp.eq.f32.partialorder %v1981_v63, 8.507059e+37  ;;  %vm2001_vm15 = vweird.f32 %v1995_v19 }
 0x5d6   :  { %v2005_v54 = vand.u32 2147483647, %v1995_v19  ;;  %v2008_v2 = vor.u32 1.1754944e-38, %v2007_v11 }
 0x5d7   :  { %v2247_v28 = vpop.eup %2246 }
 0x5d8   :  { %v1951_v30 = vmul.f32 %v2247_v28, %v1949_v7  ;;  %vm1956_vm0 = vweird.f32 %v2247_v28  ;;  %vm2006_vm4 = vcmp.eq.f32.partialorder %v2005_v54, 8.507059e+37 }
 0x5d9   :  { %v2249_v31 = vpop.eup %2248  ;;  %vm1957_vm2 = vmor %vm1955_vm1, %vm1956_vm0 }
 0x5da   :  { %v1952_v33 = vsub.f32 1.0, %v1951_v30  ;;  %v2251_v38 = vpop.eup %2250  ;;  %v1973_v40 = vmul.f32 %v2249_v31, %v1971_v17  ;;  %vm1978_vm9 = vweird.f32 %v2249_v31 }
 0x5db   :  { %v1997_v45 = vmul.f32 %v2251_v38, %v1995_v19  ;;  %vm1979_vm12 = vmor %vm1977_vm11, %vm1978_vm9  ;;  %v2253_v9 = vpop.eup %2252  ;;  %vm2002_vm14 = vweird.f32 %v2251_v38 }
 0x5dc   :  { %v1953_v41 = vmul.f32 %v2247_v28, %v1952_v33  ;;  %v1974_v48 = vsub.f32 1.0, %v1973_v40  ;;  %vm2003_vm3 = vmor %vm2001_vm15, %vm2002_vm14 }
 0x5dd   :  { %v1998_v36 = vsub.f32 1.0, %v1997_v45 }
 0x5de   :  { %v1954_v52 = vadd.f32 %v2247_v28, %v1953_v41  ;;  %v1975_v15 = vmul.f32 %v2249_v31, %v1974_v48 }
 0x5df   :  { %v1999_v39 = vmul.f32 %v2251_v38, %v1998_v36 }
 0x5e0   :  { %v1958_v0 = vsel %vm1957_vm2, %v2247_v28, %v1954_v52  ;;  %v1976_v42 = vadd.f32 %v2249_v31, %v1975_v15 }
 0x5e1   :  { %v1963_v49 = vsel %vm1960_vm10, %v1962_v5, %v1958_v0  ;;  %v2000_v57 = vadd.f32 %v2251_v38, %v1999_v39 }
 0x5e2   :  { %v1980_v61 = vsel %vm1979_vm12, %v2249_v31, %v1976_v42  ;;  %v2012_v46 = vmul.f32 %v2253_v9, %v1963_v49 }
 0x5e3   :  { %v1985_v55 = vsel %vm1982_vm13, %v1984_v62, %v1980_v61  ;;  %v2004_v27 = vsel %vm2003_vm3, %v2251_v38, %v2000_v57 }
 0x5e4   :  { %v2011_v13 = vmul.f32 %v1985_v55, %v4110_v3  ;;  %v2009_v58 = vsel %vm2006_vm4, %v2008_v2, %v2004_v27  ;;  %v2059_v3 = vand.u32 127, %v2058_v37 }
 0x5e6   :  { %v2013_v18 = vadd.f32 %v2012_v46, %v2011_v13  ;;  %vm2060_vm5 = vcmp.lt.s32.totalorder %v2059_v3, 6 }
 0x5e8   :  { %2254 = vtanh.f32 %v2013_v18 }
 0x5ee   :  { %v2255_v43 = vpop.eup %2254 }
 0x5ef   :  { %v2015_v59 = vmul.f32 %v2255_v43, %v2009_v58 }
 0x5f1   :  { %2016 = vst [vmem:[#allocation3 + $0x7] sm:$0x1] %v2015_v59 }
 0x5f8   :  { %v2017_v1 = vld [vmem:[#allocation3] sm:$0xff] }
 0x5f9   :  { %2054 = vmatmul.f32.vlgmr.msrb.gmra.mxu0 %v2017_v1 }
 0x676   :  { %v2055_v50 = vpop.f32.mrf.mxu0 }
 0x677   :  { %v2056_v16 = vadd.f32 %v2127_v12, %v2055_v50 }
 0x679   :  { %v2061_v32 = vsel %vm2060_vm5, %v2056_v16, -inf }
 0x67a   :  { %2062 = vmax.xlane.f32.xlu0 %v2061_v32 }
 0x6ed   :  { %v2063_v53 = vpop.xlane.xlu0 %2062 }
 0x6ee   :  { %v2064_v21 = vsub.f32 %v2061_v32, %v2063_v53 }
 0x6f0   :  { %v2065_v20 = vmul.f32 1.442695, %v2064_v21 }
 0x6f2   :  { %2256 = vpow2.f32 %v2065_v20 }
 0x6f8   :  { %v2257_v51 = vpop.eup %2256 }
 0x6f9   :  { %2067 = vadd.xlane.f32.xlu0 %v2257_v51 }
 0x76c   :  { %v2068_v35 = vpop.xlane.xlu0 %2067 }
 0x76d   :  { %2258 = vrcp.f32 %v2068_v35  ;;  %v2080_v6 = vand.u32 2147483648, %v2068_v35  ;;  %v2078_v8 = vand.u32 2147483647, %v2068_v35  ;;  %vm2074_vm7 = vweird.f32 %v2068_v35 }
 0x76f   :  { %v2081_v24 = vor.u32 1.1754944e-38, %v2080_v6  ;;  %vm2079_vm0 = vcmp.eq.f32.partialorder %v2078_v8, 8.507059e+37 }
 0x773   :  { %v2259_v4 = vpop.eup %2258 }
 0x774   :  { %v2070_v22 = vmul.f32 %v2259_v4, %v2068_v35  ;;  %vm2075_vm6 = vweird.f32 %v2259_v4 }
 0x775   :  { %vm2076_vm8 = vmor %vm2074_vm7, %vm2075_vm6 }
 0x776   :  { %v2071_v60 = vsub.f32 1.0, %v2070_v22 }
 0x778   :  { %v2072_v7 = vmul.f32 %v2259_v4, %v2071_v60 }
 0x77a   :  { %v2073_v10 = vadd.f32 %v2259_v4, %v2072_v7 }
 0x77c   :  { %v2077_v14 = vsel %vm2076_vm8, %v2259_v4, %v2073_v10 }
 0x77d   :  { %v2082_v17 = vsel %vm2079_vm0, %v2081_v24, %v2077_v14 }
 0x77e   :  { %v2083_v19 = vmul.f32 %v2257_v51, %v2082_v17 }
 0x780   :  { %2084 = vst [vmem:[#allocation4] sm:$0xff] %v2083_v19 }
 0x781   :  { %2095 = dma.vmem_to_hbm [thread:$0]  %s2091_s24, 128, %s2093_s27, [#allocation5]  }
 0x782   :  { %2284 = dma.done.wait [#allocation5], 128  }
 0x783   :  { %2285 = vsyncadd [#allocation5], 4294967168 }
 0x784   :  { %2100 = vsyncpa [#allocation5], 1 }

</bundles_post_ra>
